<compile_context>
chip_gen: v7x
topology: tpu7x:2x2x1
jax: 0.10.0
libtpu: 0.0.40
codegen_flags: <defaults>
</compile_context>

<pallas_src>
import functools

import jax
import jax.numpy as jnp
from jax import lax
from jax.experimental import pallas as pl
from jax.experimental.pallas import tpu as pltpu

EMBEDDING_DIMENSION = 250


# ----------------------------------------------------------------------------
# Fused kernel: LSTM recurrence + MLP head + softmax(dim=0).
# ----------------------------------------------------------------------------
def _model0_kernel(S, B, H, N1, N2, OP,
                   # inputs
                   x_ref, wih_ref, whh_ref, bias_ref,
                   w1_hbm, w2_hbm, w3_hbm,
                   # outputs
                   out_ref,
                   # scratch
                   w1_vmem, w2_vmem, w3_vmem, dma_sem):
    G = 4 * H

    # ---- Start MLP-weight fetches now; they land while the recurrence runs.
    cp_w1 = pltpu.make_async_copy(w1_hbm, w1_vmem, dma_sem.at[0])
    cp_w2 = pltpu.make_async_copy(w2_hbm, w2_vmem, dma_sem.at[1])
    cp_w3 = pltpu.make_async_copy(w3_hbm, w3_vmem, dma_sem.at[2])
    cp_w1.start()
    cp_w2.start()
    cp_w3.start()

    # ---- Unpack the packed small operands (static, lane-tile-aligned slices).
    o1 = G
    o2 = o1 + N1
    o3 = o2 + N2
    b_lstm = bias_ref[:, 0:o1]          # (1, 4H)   (g-lanes pre-scaled by 2)
    b1 = bias_ref[:, o1:o2]             # (1, N1)
    b2 = bias_ref[:, o2:o3]             # (1, N2)
    b3 = bias_ref[:, o3:o3 + OP]        # (1, OP)

    # ---- Hoisted input projection: one (S*B, E) @ (E, 4H) bf16 matmul + bias.
    xg = (jnp.dot(x_ref[...], wih_ref[...],
                  preferred_element_type=jnp.float32) + b_lstm)   # (S*B, 4H)

    whh = whh_ref[...]                  # (4H, 4H); rows [H:) are zero

    # Constants for the single-sigmoid gate activation: tanh(z)=2*sigmoid(2z)-1
    # (the 2z pre-scale of the g-gate columns lives in the weights already).
    lane = lax.broadcasted_iota(jnp.int32, (B, G), 1)
    g_mask = (lane >= 2 * H) & (lane < 3 * H)
    g_scale = jnp.where(g_mask, 2.0, 1.0)
    g_off = jnp.where(g_mask, 1.0, 0.0)

    # h / c carried full-lane (B, 4H); only lanes [0, H) are meaningful, the
    # rest stay bounded garbage that the zero-padded weights ignore.
    h = jnp.zeros((B, G), jnp.float32)
    c = jnp.zeros((B, G), jnp.float32)

    # Statically unrolled recurrence (S is a small compile-time constant).
    # TODO(synk): switch to lax.fori_loop(..., unroll=k) if S ever grows large.
    for t in range(S):
        gates = xg[t * B:(t + 1) * B, :] + jnp.dot(
            h, whh, preferred_element_type=jnp.float32)           # (B, 4H)
        s = jax.nn.sigmoid(gates)        # one EUP pass covers all four gates
        act = s * g_scale - g_off        # i,f,o: sigmoid(z) ; g: tanh(z)
        # Align f/g/o onto the same lanes as i via XLU rolls (off the VALU
        # critical path); the c/h update then stays on full (B, 4H) vregs.
        act_f = pltpu.roll(act, shift=3 * H, axis=1)   # f -> lanes [0, H)
        act_g = pltpu.roll(act, shift=2 * H, axis=1)   # g -> lanes [0, H)
        act_o = pltpu.roll(act, shift=H, axis=1)       # o -> lanes [0, H)
        c = act_f * c + act * act_g
        h = act_o * jnp.tanh(c)

    # ---- MLP head: relu(L1) -> relu(L2) -> L3 -> softmax over dim=0 (batch).
    cp_w1.wait()
    a1 = jnp.maximum(
        jnp.dot(h.astype(jnp.bfloat16), w1_vmem[...],
                preferred_element_type=jnp.float32) + b1, 0.0)
    cp_w2.wait()
    a2 = jnp.maximum(
        jnp.dot(a1.astype(jnp.bfloat16), w2_vmem[...],
                preferred_element_type=jnp.float32) + b2, 0.0)
    cp_w3.wait()
    logits = jnp.dot(a2, w3_vmem[...],
                     preferred_element_type=jnp.float32) + b3      # (B, OP)

    # softmax over dim=0 (the batch axis), matching F.softmax(tag_space, dim=0).
    m = jnp.max(logits, axis=0, keepdims=True)
    e = jnp.exp(logits - m)
    out_ref[...] = e / jnp.sum(e, axis=0, keepdims=True)


# ----------------------------------------------------------------------------
# One-time parameter preparation: fold the g-gate 2x pre-scale, zero-pad to
# lane-dense widths, cast the large weights to bf16, pack the small biases.
# ----------------------------------------------------------------------------
def prepare_params(params, n1_pad=512, n2_pad=256, o_pad=128):
    E, G = params["w_ih"].shape
    H = G // 4
    N1 = params["w1"].shape[1]
    N2 = params["w2"].shape[1]
    O = params["w3"].shape[1]
    assert N1 <= n1_pad and N2 <= n2_pad and O <= o_pad

    # tanh(z) = 2*sigmoid(2z) - 1  ->  scale the g-gate columns by 2.
    col = jnp.arange(G)
    gsc = jnp.where((col >= 2 * H) & (col < 3 * H), 2.0, 1.0).astype(jnp.float32)

    w_ih = (params["w_ih"] * gsc[None, :]).astype(jnp.bfloat16)        # (E, 4H)
    b_lstm = params["b_lstm"] * gsc[None, :]                           # (1, 4H)
    whh = jnp.zeros((G, G), jnp.float32).at[:H, :].set(
        params["w_hh"] * gsc[None, :])                                 # (4H, 4H)

    w1 = jnp.zeros((G, n1_pad), jnp.bfloat16).at[:H, :N1].set(
        params["w1"].astype(jnp.bfloat16))
    b1 = jnp.zeros((1, n1_pad), jnp.float32).at[:, :N1].set(params["b1"])
    w2 = jnp.zeros((n1_pad, n2_pad), jnp.bfloat16).at[:N1, :N2].set(
        params["w2"].astype(jnp.bfloat16))
    b2 = jnp.zeros((1, n2_pad), jnp.float32).at[:, :N2].set(params["b2"])
    w3 = jnp.zeros((n2_pad, o_pad), jnp.float32).at[:N2, :O].set(params["w3"])
    b3 = jnp.zeros((1, o_pad), jnp.float32).at[:, :O].set(params["b3"])

    bias = jnp.concatenate([b_lstm, b1, b2, b3], axis=1)   # (1, G+N1+N2+OP)

    return {
        "w_ih": w_ih, "whh": whh, "bias": bias,
        "w1": w1, "w2": w2, "w3": w3,
        "dims": (H, n1_pad, n2_pad, O, o_pad),
    }


def model0_forward(word_vector, prep):
    """word_vector: (S, B, E) time-major input; returns softmax(dim=0), (B, O)."""
    S, B, E = word_vector.shape
    H, N1, N2, O, OP = prep["dims"]
    G = 4 * H

    x_flat = word_vector.reshape(S * B, E).astype(jnp.bfloat16)

    vmem = pl.BlockSpec(memory_space=pltpu.MemorySpace.VMEM)
    hbm = pl.BlockSpec(memory_space=pl.ANY)
    kernel = functools.partial(_model0_kernel, S, B, H, N1, N2, OP)

    out_padded = pl.pallas_call(
        kernel,
        out_shape=jax.ShapeDtypeStruct((B, OP), jnp.float32),
        in_specs=[vmem, vmem, vmem, vmem, hbm, hbm, hbm],
        out_specs=vmem,
        scratch_shapes=[
            pltpu.VMEM((G, N1), jnp.bfloat16),    # w1 landing buffer
            pltpu.VMEM((N1, N2), jnp.bfloat16),   # w2 landing buffer
            pltpu.VMEM((N2, OP), jnp.float32),    # w3 landing buffer
            pltpu.SemaphoreType.DMA((3,)),
        ],
    )(x_flat, prep["w_ih"], prep["whh"], prep["bias"],
      prep["w1"], prep["w2"], prep["w3"])

    return out_padded[:, :O]


# ----------------------------------------------------------------------------
# Pure-JAX f32 reference (mirrors the PyTorch module exactly).
# ----------------------------------------------------------------------------
def model0_reference(word_vector, params):
    S, B, E = word_vector.shape
    H = params["w_hh"].shape[0]
    h = jnp.zeros((B, H), jnp.float32)
    c = jnp.zeros((B, H), jnp.float32)
    for t in range(S):
        gates = (word_vector[t] @ params["w_ih"] + h @ params["w_hh"]
                 + params["b_lstm"])
        i = jax.nn.sigmoid(gates[:, 0 * H:1 * H])
        f = jax.nn.sigmoid(gates[:, 1 * H:2 * H])
        g = jnp.tanh(gates[:, 2 * H:3 * H])
        o = jax.nn.sigmoid(gates[:, 3 * H:4 * H])
        c = f * c + i * g
        h = o * jnp.tanh(c)
    a1 = jax.nn.relu(h @ params["w1"] + params["b1"])
    a2 = jax.nn.relu(a1 @ params["w2"] + params["b2"])
    logits = a2 @ params["w3"] + params["b3"]
    return jax.nn.softmax(logits, axis=0)


if __name__ == "__main__":
    S, B = 8, 2                     # seq_len, batch
    E = EMBEDDING_DIMENSION         # 250
    H = 32                          # hidden_dimension
    O = 10                          # output_dimension

    key = jax.random.PRNGKey(0)
    ks = jax.random.split(key, 10)
    scale = 0.1

    # Deterministic synthetic parameters, stored already transposed so that
    # y = x @ W + b matches PyTorch's x @ W_pt.T + b; b_lstm is b_ih + b_hh.
    params = {
        "w_ih": jax.random.normal(ks[0], (E, 4 * H), jnp.float32) * scale,
        "w_hh": jax.random.normal(ks[1], (H, 4 * H), jnp.float32) * scale,
        "b_lstm": jax.random.normal(ks[2], (1, 4 * H), jnp.float32) * scale,
        "w1": jax.random.normal(ks[3], (H, 500), jnp.float32) * scale,
        "b1": jax.random.normal(ks[4], (1, 500), jnp.float32) * scale,
        "w2": jax.random.normal(ks[5], (500, 250), jnp.float32) * scale,
        "b2": jax.random.normal(ks[6], (1, 250), jnp.float32) * scale,
        "w3": jax.random.normal(ks[7], (250, O), jnp.float32) * scale,
        "b3": jax.random.normal(ks[8], (1, O), jnp.float32) * scale,
    }
    word_vector = jax.random.normal(ks[9], (S, B, E), jnp.float32)

    prep = prepare_params(params)
    fwd = jax.jit(functools.partial(model0_forward, prep=prep))

    out = fwd(word_vector)
    jax.block_until_ready(out)
    assert out.shape == (B, O)

    ref = model0_reference(word_vector, params)
    err = float(jnp.max(jnp.abs(out - ref)))
    assert err < 3e-2, f"mismatch vs f32 reference: max abs err = {err}"

    print("KERNEL_OK")
</pallas_src>

<mosaic_0001>
module attributes {stable_mosaic.version = 11 : i64} {
  func.func @_model0_kernel(%arg0: memref<16x250xbf16, #tpu.memory_space<vmem>>, %arg1: memref<250x128xbf16, #tpu.memory_space<vmem>>, %arg2: memref<128x128xf32, #tpu.memory_space<vmem>>, %arg3: memref<1x1024xf32, #tpu.memory_space<vmem>>, %arg4: memref<128x512xbf16, #tpu.memory_space<any>>, %arg5: memref<512x256xbf16, #tpu.memory_space<any>>, %arg6: memref<256x128xf32, #tpu.memory_space<any>>, %arg7: memref<2x128xf32, #tpu.memory_space<vmem>>, %arg8: memref<128x512xbf16, #tpu.memory_space<vmem>>, %arg9: memref<512x256xbf16, #tpu.memory_space<vmem>>, %arg10: memref<256x128xf32, #tpu.memory_space<vmem>>, %arg11: memref<3x!tpu.dma_semaphore, #tpu.memory_space<semaphore_mem>>) attributes {dimension_semantics = [], scalar_prefetch = 0 : i64, scratch_operands = 4 : i64, tpu.core_type = #tpu.core_type<tc>} {
    %c0_i32 = arith.constant 0 : i32
    %0 = tpu.memref_slice %arg11[%c0_i32] : memref<3x!tpu.dma_semaphore, #tpu.memory_space<semaphore_mem>> -> memref<1x!tpu.dma_semaphore, #tpu.memory_space<semaphore_mem>>
    %1 = tpu.memref_squeeze %0 : memref<1x!tpu.dma_semaphore, #tpu.memory_space<semaphore_mem>> -> memref<!tpu.dma_semaphore, #tpu.memory_space<semaphore_mem>>
    tpu.enqueue_dma source(%arg4 : memref<128x512xbf16, #tpu.memory_space<any>>) target(%arg8 : memref<128x512xbf16, #tpu.memory_space<vmem>>) target_semaphore(%1 : memref<!tpu.dma_semaphore, #tpu.memory_space<semaphore_mem>>)
    %c1_i32 = arith.constant 1 : i32
    %2 = tpu.memref_slice %arg11[%c1_i32] : memref<3x!tpu.dma_semaphore, #tpu.memory_space<semaphore_mem>> -> memref<1x!tpu.dma_semaphore, #tpu.memory_space<semaphore_mem>>
    %3 = tpu.memref_squeeze %2 : memref<1x!tpu.dma_semaphore, #tpu.memory_space<semaphore_mem>> -> memref<!tpu.dma_semaphore, #tpu.memory_space<semaphore_mem>>
    tpu.enqueue_dma source(%arg5 : memref<512x256xbf16, #tpu.memory_space<any>>) target(%arg9 : memref<512x256xbf16, #tpu.memory_space<vmem>>) target_semaphore(%3 : memref<!tpu.dma_semaphore, #tpu.memory_space<semaphore_mem>>)
    %c2_i32 = arith.constant 2 : i32
    %4 = tpu.memref_slice %arg11[%c2_i32] : memref<3x!tpu.dma_semaphore, #tpu.memory_space<semaphore_mem>> -> memref<1x!tpu.dma_semaphore, #tpu.memory_space<semaphore_mem>>
    %5 = tpu.memref_squeeze %4 : memref<1x!tpu.dma_semaphore, #tpu.memory_space<semaphore_mem>> -> memref<!tpu.dma_semaphore, #tpu.memory_space<semaphore_mem>>
    tpu.enqueue_dma source(%arg6 : memref<256x128xf32, #tpu.memory_space<any>>) target(%arg10 : memref<256x128xf32, #tpu.memory_space<vmem>>) target_semaphore(%5 : memref<!tpu.dma_semaphore, #tpu.memory_space<semaphore_mem>>)
    %c0 = arith.constant 0 : index
    %c0_0 = arith.constant 0 : index
    %6 = vector.load %arg3[%c0, %c0_0] : memref<1x1024xf32, #tpu.memory_space<vmem>>, vector<1x128xf32>
    %c0_1 = arith.constant 0 : index
    %c128 = arith.constant 128 : index
    %7 = vector.load %arg3[%c0_1, %c128] : memref<1x1024xf32, #tpu.memory_space<vmem>>, vector<1x512xf32>
    %c0_2 = arith.constant 0 : index
    %c640 = arith.constant 640 : index
    %8 = vector.load %arg3[%c0_2, %c640] : memref<1x1024xf32, #tpu.memory_space<vmem>>, vector<1x256xf32>
    %c0_3 = arith.constant 0 : index
    %c896 = arith.constant 896 : index
    %9 = vector.load %arg3[%c0_3, %c896] : memref<1x1024xf32, #tpu.memory_space<vmem>>, vector<1x128xf32>
    %c0_4 = arith.constant 0 : index
    %c0_5 = arith.constant 0 : index
    %10 = vector.load %arg0[%c0_4, %c0_5] : memref<16x250xbf16, #tpu.memory_space<vmem>>, vector<16x250xbf16>
    %c0_6 = arith.constant 0 : index
    %c0_7 = arith.constant 0 : index
    %11 = vector.load %arg1[%c0_6, %c0_7] : memref<250x128xbf16, #tpu.memory_space<vmem>>, vector<250x128xbf16>
    %cst = arith.constant dense<0.000000e+00> : vector<16x128xf32>
    %12 = tpu.matmul %10, %11, %cst {dimension_numbers = #tpu.dot_dimension_numbers<[1], [0], [0], [1], [0, 0, 1, 1], [], []>} : vector<16x250xbf16>, vector<250x128xbf16>, vector<16x128xf32> -> vector<16x128xf32>
    %13 = vector.broadcast %6 : vector<1x128xf32> to vector<16x128xf32>
    %14 = arith.addf %12, %13 : vector<16x128xf32>
    %c0_8 = arith.constant 0 : index
    %c0_9 = arith.constant 0 : index
    %15 = vector.load %arg2[%c0_8, %c0_9] : memref<128x128xf32, #tpu.memory_space<vmem>>, vector<128x128xf32>
    %16 = tpu.iota {dimensions = array<i32: 1>} : vector<2x128xi32>
    %c64_i32 = arith.constant 64 : i32
    %17 = vector.broadcast %c64_i32 : i32 to vector<2x128xi32>
    %18 = arith.cmpi sge, %16, %17 : vector<2x128xi32>
    %c96_i32 = arith.constant 96 : i32
    %19 = vector.broadcast %c96_i32 : i32 to vector<2x128xi32>
    %20 = arith.cmpi slt, %16, %19 : vector<2x128xi32>
    %21 = arith.andi %18, %20 : vector<2x128xi1>
    %cst_10 = arith.constant 2.000000e+00 : f32
    %cst_11 = arith.constant 1.000000e+00 : f32
    %22 = vector.broadcast %cst_10 : f32 to vector<2x128xf32>
    %23 = vector.broadcast %cst_11 : f32 to vector<2x128xf32>
    %24 = arith.select %21, %22, %23 : vector<2x128xi1>, vector<2x128xf32>
    %cst_12 = arith.constant 1.000000e+00 : f32
    %cst_13 = arith.constant 0.000000e+00 : f32
    %25 = vector.broadcast %cst_12 : f32 to vector<2x128xf32>
    %26 = vector.broadcast %cst_13 : f32 to vector<2x128xf32>
    %27 = arith.select %21, %25, %26 : vector<2x128xi1>, vector<2x128xf32>
    %cst_14 = arith.constant 0.000000e+00 : f32
    %28 = vector.broadcast %cst_14 : f32 to vector<2x128xf32>
    %cst_15 = arith.constant 0.000000e+00 : f32
    %29 = vector.broadcast %cst_15 : f32 to vector<2x128xf32>
    %30 = vector.extract_strided_slice %14 {offsets = [0, 0], sizes = [2, 128], strides = [1, 1]} : vector<16x128xf32> to vector<2x128xf32>
    %cst_16 = arith.constant dense<0.000000e+00> : vector<2x128xf32>
    %31 = tpu.matmul %28, %15, %cst_16 {dimension_numbers = #tpu.dot_dimension_numbers<[1], [0], [0], [1], [0, 0, 1, 1], [], []>} : vector<2x128xf32>, vector<128x128xf32>, vector<2x128xf32> -> vector<2x128xf32>
    %32 = arith.addf %30, %31 : vector<2x128xf32>
    %33 = arith.negf %32 : vector<2x128xf32>
    %34 = math.exp %33 : vector<2x128xf32>
    %cst_17 = arith.constant 1.000000e+00 : f32
    %35 = vector.broadcast %cst_17 : f32 to vector<2x128xf32>
    %36 = arith.addf %35, %34 : vector<2x128xf32>
    %37 = arith.divf %35, %36 : vector<2x128xf32>
    %38 = arith.mulf %37, %24 : vector<2x128xf32>
    %39 = arith.subf %38, %27 : vector<2x128xf32>
    %c96_i32_18 = arith.constant 96 : i32
    %40 = tpu.dynamic_rotate %39 by %c96_i32_18 dim 1 : vector<2x128xf32>, i32 -> vector<2x128xf32>
    %c64_i32_19 = arith.constant 64 : i32
    %41 = tpu.dynamic_rotate %39 by %c64_i32_19 dim 1 : vector<2x128xf32>, i32 -> vector<2x128xf32>
    %c32_i32 = arith.constant 32 : i32
    %42 = tpu.dynamic_rotate %39 by %c32_i32 dim 1 : vector<2x128xf32>, i32 -> vector<2x128xf32>
    %43 = arith.mulf %40, %29 : vector<2x128xf32>
    %44 = arith.mulf %39, %41 : vector<2x128xf32>
    %45 = arith.addf %43, %44 : vector<2x128xf32>
    %46 = math.tanh %45 : vector<2x128xf32>
    %47 = arith.mulf %42, %46 : vector<2x128xf32>
    %48 = vector.extract_strided_slice %14 {offsets = [2, 0], sizes = [2, 128], strides = [1, 1]} : vector<16x128xf32> to vector<2x128xf32>
    %cst_20 = arith.constant dense<0.000000e+00> : vector<2x128xf32>
    %49 = tpu.matmul %47, %15, %cst_20 {dimension_numbers = #tpu.dot_dimension_numbers<[1], [0], [0], [1], [0, 0, 1, 1], [], []>} : vector<2x128xf32>, vector<128x128xf32>, vector<2x128xf32> -> vector<2x128xf32>
    %50 = arith.addf %48, %49 : vector<2x128xf32>
    %51 = arith.negf %50 : vector<2x128xf32>
    %52 = math.exp %51 : vector<2x128xf32>
    %cst_21 = arith.constant 1.000000e+00 : f32
    %53 = vector.broadcast %cst_21 : f32 to vector<2x128xf32>
    %54 = arith.addf %53, %52 : vector<2x128xf32>
    %55 = arith.divf %53, %54 : vector<2x128xf32>
    %56 = arith.mulf %55, %24 : vector<2x128xf32>
    %57 = arith.subf %56, %27 : vector<2x128xf32>
    %c96_i32_22 = arith.constant 96 : i32
    %58 = tpu.dynamic_rotate %57 by %c96_i32_22 dim 1 : vector<2x128xf32>, i32 -> vector<2x128xf32>
    %c64_i32_23 = arith.constant 64 : i32
    %59 = tpu.dynamic_rotate %57 by %c64_i32_23 dim 1 : vector<2x128xf32>, i32 -> vector<2x128xf32>
    %c32_i32_24 = arith.constant 32 : i32
    %60 = tpu.dynamic_rotate %57 by %c32_i32_24 dim 1 : vector<2x128xf32>, i32 -> vector<2x128xf32>
    %61 = arith.mulf %58, %45 : vector<2x128xf32>
    %62 = arith.mulf %57, %59 : vector<2x128xf32>
    %63 = arith.addf %61, %62 : vector<2x128xf32>
    %64 = math.tanh %63 : vector<2x128xf32>
    %65 = arith.mulf %60, %64 : vector<2x128xf32>
    %66 = vector.extract_strided_slice %14 {offsets = [4, 0], sizes = [2, 128], strides = [1, 1]} : vector<16x128xf32> to vector<2x128xf32>
    %cst_25 = arith.constant dense<0.000000e+00> : vector<2x128xf32>
    %67 = tpu.matmul %65, %15, %cst_25 {dimension_numbers = #tpu.dot_dimension_numbers<[1], [0], [0], [1], [0, 0, 1, 1], [], []>} : vector<2x128xf32>, vector<128x128xf32>, vector<2x128xf32> -> vector<2x128xf32>
    %68 = arith.addf %66, %67 : vector<2x128xf32>
    %69 = arith.negf %68 : vector<2x128xf32>
    %70 = math.exp %69 : vector<2x128xf32>
    %cst_26 = arith.constant 1.000000e+00 : f32
    %71 = vector.broadcast %cst_26 : f32 to vector<2x128xf32>
    %72 = arith.addf %71, %70 : vector<2x128xf32>
    %73 = arith.divf %71, %72 : vector<2x128xf32>
    %74 = arith.mulf %73, %24 : vector<2x128xf32>
    %75 = arith.subf %74, %27 : vector<2x128xf32>
    %c96_i32_27 = arith.constant 96 : i32
    %76 = tpu.dynamic_rotate %75 by %c96_i32_27 dim 1 : vector<2x128xf32>, i32 -> vector<2x128xf32>
    %c64_i32_28 = arith.constant 64 : i32
    %77 = tpu.dynamic_rotate %75 by %c64_i32_28 dim 1 : vector<2x128xf32>, i32 -> vector<2x128xf32>
    %c32_i32_29 = arith.constant 32 : i32
    %78 = tpu.dynamic_rotate %75 by %c32_i32_29 dim 1 : vector<2x128xf32>, i32 -> vector<2x128xf32>
    %79 = arith.mulf %76, %63 : vector<2x128xf32>
    %80 = arith.mulf %75, %77 : vector<2x128xf32>
    %81 = arith.addf %79, %80 : vector<2x128xf32>
    %82 = math.tanh %81 : vector<2x128xf32>
    %83 = arith.mulf %78, %82 : vector<2x128xf32>
    %84 = vector.extract_strided_slice %14 {offsets = [6, 0], sizes = [2, 128], strides = [1, 1]} : vector<16x128xf32> to vector<2x128xf32>
    %cst_30 = arith.constant dense<0.000000e+00> : vector<2x128xf32>
    %85 = tpu.matmul %83, %15, %cst_30 {dimension_numbers = #tpu.dot_dimension_numbers<[1], [0], [0], [1], [0, 0, 1, 1], [], []>} : vector<2x128xf32>, vector<128x128xf32>, vector<2x128xf32> -> vector<2x128xf32>
    %86 = arith.addf %84, %85 : vector<2x128xf32>
    %87 = arith.negf %86 : vector<2x128xf32>
    %88 = math.exp %87 : vector<2x128xf32>
    %cst_31 = arith.constant 1.000000e+00 : f32
    %89 = vector.broadcast %cst_31 : f32 to vector<2x128xf32>
    %90 = arith.addf %89, %88 : vector<2x128xf32>
    %91 = arith.divf %89, %90 : vector<2x128xf32>
    %92 = arith.mulf %91, %24 : vector<2x128xf32>
    %93 = arith.subf %92, %27 : vector<2x128xf32>
    %c96_i32_32 = arith.constant 96 : i32
    %94 = tpu.dynamic_rotate %93 by %c96_i32_32 dim 1 : vector<2x128xf32>, i32 -> vector<2x128xf32>
    %c64_i32_33 = arith.constant 64 : i32
    %95 = tpu.dynamic_rotate %93 by %c64_i32_33 dim 1 : vector<2x128xf32>, i32 -> vector<2x128xf32>
    %c32_i32_34 = arith.constant 32 : i32
    %96 = tpu.dynamic_rotate %93 by %c32_i32_34 dim 1 : vector<2x128xf32>, i32 -> vector<2x128xf32>
    %97 = arith.mulf %94, %81 : vector<2x128xf32>
    %98 = arith.mulf %93, %95 : vector<2x128xf32>
    %99 = arith.addf %97, %98 : vector<2x128xf32>
    %100 = math.tanh %99 : vector<2x128xf32>
    %101 = arith.mulf %96, %100 : vector<2x128xf32>
    %102 = vector.extract_strided_slice %14 {offsets = [8, 0], sizes = [2, 128], strides = [1, 1]} : vector<16x128xf32> to vector<2x128xf32>
    %cst_35 = arith.constant dense<0.000000e+00> : vector<2x128xf32>
    %103 = tpu.matmul %101, %15, %cst_35 {dimension_numbers = #tpu.dot_dimension_numbers<[1], [0], [0], [1], [0, 0, 1, 1], [], []>} : vector<2x128xf32>, vector<128x128xf32>, vector<2x128xf32> -> vector<2x128xf32>
    %104 = arith.addf %102, %103 : vector<2x128xf32>
    %105 = arith.negf %104 : vector<2x128xf32>
    %106 = math.exp %105 : vector<2x128xf32>
    %cst_36 = arith.constant 1.000000e+00 : f32
    %107 = vector.broadcast %cst_36 : f32 to vector<2x128xf32>
    %108 = arith.addf %107, %106 : vector<2x128xf32>
    %109 = arith.divf %107, %108 : vector<2x128xf32>
    %110 = arith.mulf %109, %24 : vector<2x128xf32>
    %111 = arith.subf %110, %27 : vector<2x128xf32>
    %c96_i32_37 = arith.constant 96 : i32
    %112 = tpu.dynamic_rotate %111 by %c96_i32_37 dim 1 : vector<2x128xf32>, i32 -> vector<2x128xf32>
    %c64_i32_38 = arith.constant 64 : i32
    %113 = tpu.dynamic_rotate %111 by %c64_i32_38 dim 1 : vector<2x128xf32>, i32 -> vector<2x128xf32>
    %c32_i32_39 = arith.constant 32 : i32
    %114 = tpu.dynamic_rotate %111 by %c32_i32_39 dim 1 : vector<2x128xf32>, i32 -> vector<2x128xf32>
    %115 = arith.mulf %112, %99 : vector<2x128xf32>
    %116 = arith.mulf %111, %113 : vector<2x128xf32>
    %117 = arith.addf %115, %116 : vector<2x128xf32>
    %118 = math.tanh %117 : vector<2x128xf32>
    %119 = arith.mulf %114, %118 : vector<2x128xf32>
    %120 = vector.extract_strided_slice %14 {offsets = [10, 0], sizes = [2, 128], strides = [1, 1]} : vector<16x128xf32> to vector<2x128xf32>
    %cst_40 = arith.constant dense<0.000000e+00> : vector<2x128xf32>
    %121 = tpu.matmul %119, %15, %cst_40 {dimension_numbers = #tpu.dot_dimension_numbers<[1], [0], [0], [1], [0, 0, 1, 1], [], []>} : vector<2x128xf32>, vector<128x128xf32>, vector<2x128xf32> -> vector<2x128xf32>
    %122 = arith.addf %120, %121 : vector<2x128xf32>
    %123 = arith.negf %122 : vector<2x128xf32>
    %124 = math.exp %123 : vector<2x128xf32>
    %cst_41 = arith.constant 1.000000e+00 : f32
    %125 = vector.broadcast %cst_41 : f32 to vector<2x128xf32>
    %126 = arith.addf %125, %124 : vector<2x128xf32>
    %127 = arith.divf %125, %126 : vector<2x128xf32>
    %128 = arith.mulf %127, %24 : vector<2x128xf32>
    %129 = arith.subf %128, %27 : vector<2x128xf32>
    %c96_i32_42 = arith.constant 96 : i32
    %130 = tpu.dynamic_rotate %129 by %c96_i32_42 dim 1 : vector<2x128xf32>, i32 -> vector<2x128xf32>
    %c64_i32_43 = arith.constant 64 : i32
    %131 = tpu.dynamic_rotate %129 by %c64_i32_43 dim 1 : vector<2x128xf32>, i32 -> vector<2x128xf32>
    %c32_i32_44 = arith.constant 32 : i32
    %132 = tpu.dynamic_rotate %129 by %c32_i32_44 dim 1 : vector<2x128xf32>, i32 -> vector<2x128xf32>
    %133 = arith.mulf %130, %117 : vector<2x128xf32>
    %134 = arith.mulf %129, %131 : vector<2x128xf32>
    %135 = arith.addf %133, %134 : vector<2x128xf32>
    %136 = math.tanh %135 : vector<2x128xf32>
    %137 = arith.mulf %132, %136 : vector<2x128xf32>
    %138 = vector.extract_strided_slice %14 {offsets = [12, 0], sizes = [2, 128], strides = [1, 1]} : vector<16x128xf32> to vector<2x128xf32>
    %cst_45 = arith.constant dense<0.000000e+00> : vector<2x128xf32>
    %139 = tpu.matmul %137, %15, %cst_45 {dimension_numbers = #tpu.dot_dimension_numbers<[1], [0], [0], [1], [0, 0, 1, 1], [], []>} : vector<2x128xf32>, vector<128x128xf32>, vector<2x128xf32> -> vector<2x128xf32>
    %140 = arith.addf %138, %139 : vector<2x128xf32>
    %141 = arith.negf %140 : vector<2x128xf32>
    %142 = math.exp %141 : vector<2x128xf32>
    %cst_46 = arith.constant 1.000000e+00 : f32
    %143 = vector.broadcast %cst_46 : f32 to vector<2x128xf32>
    %144 = arith.addf %143, %142 : vector<2x128xf32>
    %145 = arith.divf %143, %144 : vector<2x128xf32>
    %146 = arith.mulf %145, %24 : vector<2x128xf32>
    %147 = arith.subf %146, %27 : vector<2x128xf32>
    %c96_i32_47 = arith.constant 96 : i32
    %148 = tpu.dynamic_rotate %147 by %c96_i32_47 dim 1 : vector<2x128xf32>, i32 -> vector<2x128xf32>
    %c64_i32_48 = arith.constant 64 : i32
    %149 = tpu.dynamic_rotate %147 by %c64_i32_48 dim 1 : vector<2x128xf32>, i32 -> vector<2x128xf32>
    %c32_i32_49 = arith.constant 32 : i32
    %150 = tpu.dynamic_rotate %147 by %c32_i32_49 dim 1 : vector<2x128xf32>, i32 -> vector<2x128xf32>
    %151 = arith.mulf %148, %135 : vector<2x128xf32>
    %152 = arith.mulf %147, %149 : vector<2x128xf32>
    %153 = arith.addf %151, %152 : vector<2x128xf32>
    %154 = math.tanh %153 : vector<2x128xf32>
    %155 = arith.mulf %150, %154 : vector<2x128xf32>
    %156 = vector.extract_strided_slice %14 {offsets = [14, 0], sizes = [2, 128], strides = [1, 1]} : vector<16x128xf32> to vector<2x128xf32>
    %cst_50 = arith.constant dense<0.000000e+00> : vector<2x128xf32>
    %157 = tpu.matmul %155, %15, %cst_50 {dimension_numbers = #tpu.dot_dimension_numbers<[1], [0], [0], [1], [0, 0, 1, 1], [], []>} : vector<2x128xf32>, vector<128x128xf32>, vector<2x128xf32> -> vector<2x128xf32>
    %158 = arith.addf %156, %157 : vector<2x128xf32>
    %159 = arith.negf %158 : vector<2x128xf32>
    %160 = math.exp %159 : vector<2x128xf32>
    %cst_51 = arith.constant 1.000000e+00 : f32
    %161 = vector.broadcast %cst_51 : f32 to vector<2x128xf32>
    %162 = arith.addf %161, %160 : vector<2x128xf32>
    %163 = arith.divf %161, %162 : vector<2x128xf32>
    %164 = arith.mulf %163, %24 : vector<2x128xf32>
    %165 = arith.subf %164, %27 : vector<2x128xf32>
    %c96_i32_52 = arith.constant 96 : i32
    %166 = tpu.dynamic_rotate %165 by %c96_i32_52 dim 1 : vector<2x128xf32>, i32 -> vector<2x128xf32>
    %c64_i32_53 = arith.constant 64 : i32
    %167 = tpu.dynamic_rotate %165 by %c64_i32_53 dim 1 : vector<2x128xf32>, i32 -> vector<2x128xf32>
    %c32_i32_54 = arith.constant 32 : i32
    %168 = tpu.dynamic_rotate %165 by %c32_i32_54 dim 1 : vector<2x128xf32>, i32 -> vector<2x128xf32>
    %169 = arith.mulf %166, %153 : vector<2x128xf32>
    %170 = arith.mulf %165, %167 : vector<2x128xf32>
    %171 = arith.addf %169, %170 : vector<2x128xf32>
    %172 = math.tanh %171 : vector<2x128xf32>
    %173 = arith.mulf %168, %172 : vector<2x128xf32>
    %c0_i32_55 = arith.constant 0 : i32
    %174 = tpu.memref_slice %arg11[%c0_i32_55] : memref<3x!tpu.dma_semaphore, #tpu.memory_space<semaphore_mem>> -> memref<1x!tpu.dma_semaphore, #tpu.memory_space<semaphore_mem>>
    %175 = tpu.memref_squeeze %174 : memref<1x!tpu.dma_semaphore, #tpu.memory_space<semaphore_mem>> -> memref<!tpu.dma_semaphore, #tpu.memory_space<semaphore_mem>>
    tpu.wait_dma2 semaphore(%175 : memref<!tpu.dma_semaphore, #tpu.memory_space<semaphore_mem>>) src(%arg4 : memref<128x512xbf16, #tpu.memory_space<any>>) dst(%arg8 : memref<128x512xbf16, #tpu.memory_space<vmem>>)
    %176 = arith.truncf %173 : vector<2x128xf32> to vector<2x128xbf16>
    %c0_56 = arith.constant 0 : index
    %c0_57 = arith.constant 0 : index
    %177 = vector.load %arg8[%c0_56, %c0_57] : memref<128x512xbf16, #tpu.memory_space<vmem>>, vector<128x512xbf16>
    %cst_58 = arith.constant dense<0.000000e+00> : vector<2x512xf32>
    %178 = tpu.matmul %176, %177, %cst_58 {dimension_numbers = #tpu.dot_dimension_numbers<[1], [0], [0], [1], [0, 0, 1, 1], [], []>} : vector<2x128xbf16>, vector<128x512xbf16>, vector<2x512xf32> -> vector<2x512xf32>
    %179 = vector.broadcast %7 : vector<1x512xf32> to vector<2x512xf32>
    %180 = arith.addf %178, %179 : vector<2x512xf32>
    %cst_59 = arith.constant 0.000000e+00 : f32
    %181 = vector.broadcast %cst_59 : f32 to vector<2x512xf32>
    %182 = arith.maximumf %180, %181 : vector<2x512xf32>
    %c1_i32_60 = arith.constant 1 : i32
    %183 = tpu.memref_slice %arg11[%c1_i32_60] : memref<3x!tpu.dma_semaphore, #tpu.memory_space<semaphore_mem>> -> memref<1x!tpu.dma_semaphore, #tpu.memory_space<semaphore_mem>>
    %184 = tpu.memref_squeeze %183 : memref<1x!tpu.dma_semaphore, #tpu.memory_space<semaphore_mem>> -> memref<!tpu.dma_semaphore, #tpu.memory_space<semaphore_mem>>
    tpu.wait_dma2 semaphore(%184 : memref<!tpu.dma_semaphore, #tpu.memory_space<semaphore_mem>>) src(%arg5 : memref<512x256xbf16, #tpu.memory_space<any>>) dst(%arg9 : memref<512x256xbf16, #tpu.memory_space<vmem>>)
    %185 = arith.truncf %182 : vector<2x512xf32> to vector<2x512xbf16>
    %c0_61 = arith.constant 0 : index
    %c0_62 = arith.constant 0 : index
    %186 = vector.load %arg9[%c0_61, %c0_62] : memref<512x256xbf16, #tpu.memory_space<vmem>>, vector<512x256xbf16>
    %cst_63 = arith.constant dense<0.000000e+00> : vector<2x256xf32>
    %187 = tpu.matmul %185, %186, %cst_63 {dimension_numbers = #tpu.dot_dimension_numbers<[1], [0], [0], [1], [0, 0, 1, 1], [], []>} : vector<2x512xbf16>, vector<512x256xbf16>, vector<2x256xf32> -> vector<2x256xf32>
    %188 = vector.broadcast %8 : vector<1x256xf32> to vector<2x256xf32>
    %189 = arith.addf %187, %188 : vector<2x256xf32>
    %cst_64 = arith.constant 0.000000e+00 : f32
    %190 = vector.broadcast %cst_64 : f32 to vector<2x256xf32>
    %191 = arith.maximumf %189, %190 : vector<2x256xf32>
    %c2_i32_65 = arith.constant 2 : i32
    %192 = tpu.memref_slice %arg11[%c2_i32_65] : memref<3x!tpu.dma_semaphore, #tpu.memory_space<semaphore_mem>> -> memref<1x!tpu.dma_semaphore, #tpu.memory_space<semaphore_mem>>
    %193 = tpu.memref_squeeze %192 : memref<1x!tpu.dma_semaphore, #tpu.memory_space<semaphore_mem>> -> memref<!tpu.dma_semaphore, #tpu.memory_space<semaphore_mem>>
    tpu.wait_dma2 semaphore(%193 : memref<!tpu.dma_semaphore, #tpu.memory_space<semaphore_mem>>) src(%arg6 : memref<256x128xf32, #tpu.memory_space<any>>) dst(%arg10 : memref<256x128xf32, #tpu.memory_space<vmem>>)
    %c0_66 = arith.constant 0 : index
    %c0_67 = arith.constant 0 : index
    %194 = vector.load %arg10[%c0_66, %c0_67] : memref<256x128xf32, #tpu.memory_space<vmem>>, vector<256x128xf32>
    %cst_68 = arith.constant dense<0.000000e+00> : vector<2x128xf32>
    %195 = tpu.matmul %191, %194, %cst_68 {dimension_numbers = #tpu.dot_dimension_numbers<[1], [0], [0], [1], [0, 0, 1, 1], [], []>} : vector<2x256xf32>, vector<256x128xf32>, vector<2x128xf32> -> vector<2x128xf32>
    %196 = vector.broadcast %9 : vector<1x128xf32> to vector<2x128xf32>
    %197 = arith.addf %195, %196 : vector<2x128xf32>
    %cst_69 = arith.constant dense<0xFF800000> : vector<128xf32>
    %198 = vector.multi_reduction <maximumf>, %197, %cst_69 [0] : vector<2x128xf32> to vector<128xf32>
    %199 = vector.shape_cast %198 : vector<128xf32> to vector<1x128xf32>
    %200 = vector.broadcast %199 : vector<1x128xf32> to vector<2x128xf32>
    %201 = arith.subf %197, %200 : vector<2x128xf32>
    %202 = math.exp %201 : vector<2x128xf32>
    %cst_70 = arith.constant dense<0.000000e+00> : vector<128xf32>
    %203 = vector.multi_reduction <add>, %202, %cst_70 [0] : vector<2x128xf32> to vector<128xf32>
    %204 = vector.shape_cast %203 : vector<128xf32> to vector<1x128xf32>
    %205 = vector.broadcast %204 : vector<1x128xf32> to vector<2x128xf32>
    %206 = arith.divf %202, %205 : vector<2x128xf32>
    %c0_71 = arith.constant 0 : index
    %c0_72 = arith.constant 0 : index
    %207 = vector.load %arg7[%c0_71, %c0_72] : memref<2x128xf32, #tpu.memory_space<vmem>>, vector<2x128xf32>
    tpu.vector_store %arg7[%c0_71, %c0_72], %206 {strides = array<i32>} : memref<2x128xf32, #tpu.memory_space<vmem>>, vector<2x128xf32>,
    return
  }
}

</mosaic_0001>

<bundles_post_ra>
// kernel: model0_forward.1
= control target key start
LH: loop header
LB: loop body
LE: loop exit
PB: predicated region body
PF: predicated region fallthrough
CT: control target
= control target key end

     0   :  { %12 = vsyncpa [#allocation7], 0  ;;  %s4461_s0 = inlined_call_operand.vmem [shape: bf16[16,250], index: 0, kind: input, shape index: {}]   ;;  %s4462_s1 = inlined_call_operand.vmem [shape: bf16[250,128], index: 1, kind: input, shape index: {}]   ;;  %s4463_s2 = inlined_call_operand.vmem [shape: f32[128,128], index: 2, kind: input, shape index: {}]   ;;  %s4464_s3 = inlined_call_operand.vmem [shape: f32[1,1024], index: 3, kind: input, shape index: {}]   ;;  %s4465_s4 = inlined_call_operand.vmem [shape: bf16[128,512], index: 4, kind: input, shape index: {}]   ;;  %s4466_s5 = inlined_call_operand.vmem [shape: bf16[512,256], index: 5, kind: input, shape index: {}]   ;;  %s4467_s6 = inlined_call_operand.vmem [shape: f32[256,128], index: 6, kind: input, shape index: {}]   ;;  %s4468_s7 = inlined_call_operand.hbm [shape: f32[2,128], index: 7, kind: output, shape index: {}]  }
   0x1   :  { %v39_v0 = vld [vmem:[%s4465_s4] sm:$0xf]  ;;  %v41_v1 = vld [vmem:[%s4465_s4 + $0x10] sm:$0xf]  ;;  %v43_v2 = vld [vmem:[%s4465_s4 + $0x4] sm:$0xf] }
   0x2   :  { %40 = vst [vmem:[#allocation2] sm:$0xf] %v39_v0  ;;  %42 = vst [vmem:[#allocation2 + $0x4] sm:$0xf] %v41_v1  ;;  %v45_v3 = vld [vmem:[%s4465_s4 + $0x14] sm:$0xf] }
   0x3   :  { %v47_v4 = vld [vmem:[%s4465_s4 + $0x8] sm:$0xf]  ;;  %44 = vst [vmem:[#allocation2 + $0x8] sm:$0xf] %v43_v2  ;;  %46 = vst [vmem:[#allocation2 + $0xc] sm:$0xf] %v45_v3 }
   0x4   :  { %48 = vst [vmem:[#allocation2 + $0x10] sm:$0xf] %v47_v4  ;;  %v49_v5 = vld [vmem:[%s4465_s4 + $0x18] sm:$0xf]  ;;  %v51_v6 = vld [vmem:[%s4465_s4 + $0xc] sm:$0xf] }
   0x5   :  { %v53_v7 = vld [vmem:[%s4465_s4 + $0x1c] sm:$0xff]   ;;  %50 = vst [vmem:[#allocation2 + $0x14] sm:$0xf] %v49_v5  ;;  %52 = vst [vmem:[#allocation2 + $0x18] sm:$0xf] %v51_v6 }
   0x6   :  { %54 = vst [vmem:[#allocation2 + $0x1c] sm:$0xff] %v53_v7   ;;  %v57_v8 = vld [vmem:[%s4465_s4 + $0x30] sm:$0xf]  ;;  %v59_v9 = vld [vmem:[%s4465_s4 + $0x24] sm:$0xf]  ;;  %v69_v14 = vld [vmem:[%s4465_s4 + $0x3c] sm:$0xff]  }
   0x7   :  { %v61_v10 = vld [vmem:[%s4465_s4 + $0x34] sm:$0xf]  ;;  %58 = vst [vmem:[#allocation2 + $0x24] sm:$0xf] %v57_v8  ;;  %60 = vst [vmem:[#allocation2 + $0x28] sm:$0xf] %v59_v9 }
   0x8   :  { %62 = vst [vmem:[#allocation2 + $0x2c] sm:$0xf] %v61_v10  ;;  %v63_v11 = vld [vmem:[%s4465_s4 + $0x28] sm:$0xf]  ;;  %v65_v12 = vld [vmem:[%s4465_s4 + $0x38] sm:$0xf] }
   0x9   :  { %v67_v13 = vld [vmem:[%s4465_s4 + $0x2c] sm:$0xf]  ;;  %64 = vst [vmem:[#allocation2 + $0x30] sm:$0xf] %v63_v11  ;;  %66 = vst [vmem:[#allocation2 + $0x34] sm:$0xf] %v65_v12 }
   0xa   :  { %68 = vst [vmem:[#allocation2 + $0x38] sm:$0xf] %v67_v13  ;;  %v73_v15 = vld [vmem:[%s4465_s4 + $0x50] sm:$0xf]  ;;  %v75_v16 = vld [vmem:[%s4465_s4 + $0x44] sm:$0xf] }
   0xb   :  { %70 = vst [vmem:[#allocation2 + $0x3c] sm:$0xff] %v69_v14   ;;  %74 = vst [vmem:[#allocation2 + $0x44] sm:$0xf] %v73_v15  ;;  %v77_v17 = vld [vmem:[%s4465_s4 + $0x54] sm:$0xf]  ;;  %v85_v21 = vld [vmem:[%s4465_s4 + $0x5c] sm:$0xff]  }
   0xc   :  { %76 = vst [vmem:[#allocation2 + $0x48] sm:$0xf] %v75_v16  ;;  %v79_v18 = vld [vmem:[%s4465_s4 + $0x48] sm:$0xf]  ;;  %v81_v19 = vld [vmem:[%s4465_s4 + $0x58] sm:$0xf] }
   0xd   :  { %78 = vst [vmem:[#allocation2 + $0x4c] sm:$0xf] %v77_v17  ;;  %80 = vst [vmem:[#allocation2 + $0x50] sm:$0xf] %v79_v18  ;;  %v83_v20 = vld [vmem:[%s4465_s4 + $0x4c] sm:$0xf] }
   0xe   :  { %82 = vst [vmem:[#allocation2 + $0x54] sm:$0xf] %v81_v19  ;;  %v89_v22 = vld [vmem:[%s4465_s4 + $0x70] sm:$0xf]  ;;  %84 = vst [vmem:[#allocation2 + $0x58] sm:$0xf] %v83_v20 }
   0xf   :  { %86 = vst [vmem:[#allocation2 + $0x5c] sm:$0xff] %v85_v21   ;;  %90 = vst [vmem:[#allocation2 + $0x64] sm:$0xf] %v89_v22  ;;  %v91_v23 = vld [vmem:[%s4465_s4 + $0x64] sm:$0xf]  ;;  %v101_v28 = vld [vmem:[%s4465_s4 + $0x7c] sm:$0xff]  }
  0x10   :  { %v93_v24 = vld [vmem:[%s4465_s4 + $0x74] sm:$0xf]  ;;  %v95_v25 = vld [vmem:[%s4465_s4 + $0x68] sm:$0xf]  ;;  %92 = vst [vmem:[#allocation2 + $0x68] sm:$0xf] %v91_v23 }
  0x11   :  { %94 = vst [vmem:[#allocation2 + $0x6c] sm:$0xf] %v93_v24  ;;  %96 = vst [vmem:[#allocation2 + $0x70] sm:$0xf] %v95_v25  ;;  %v97_v26 = vld [vmem:[%s4465_s4 + $0x78] sm:$0xf] }
  0x12   :  { %v99_v27 = vld [vmem:[%s4465_s4 + $0x6c] sm:$0xf]  ;;  %98 = vst [vmem:[#allocation2 + $0x74] sm:$0xf] %v97_v26  ;;  %102 = vst [vmem:[#allocation2 + $0x7c] sm:$0xff] %v101_v28   ;;  %v117_v35 = vld [vmem:[%s4465_s4 + $0x9c] sm:$0xff]  }
  0x13   :  { %100 = vst [vmem:[#allocation2 + $0x78] sm:$0xf] %v99_v27  ;;  %v105_v29 = vld [vmem:[%s4465_s4 + $0x90] sm:$0xf]  ;;  %v107_v30 = vld [vmem:[%s4465_s4 + $0x84] sm:$0xf] }
  0x14   :  { %v109_v31 = vld [vmem:[%s4465_s4 + $0x94] sm:$0xf]  ;;  %106 = vst [vmem:[#allocation2 + $0x84] sm:$0xf] %v105_v29  ;;  %108 = vst [vmem:[#allocation2 + $0x88] sm:$0xf] %v107_v30 }
  0x15   :  { %110 = vst [vmem:[#allocation2 + $0x8c] sm:$0xf] %v109_v31  ;;  %v111_v32 = vld [vmem:[%s4465_s4 + $0x88] sm:$0xf]  ;;  %v113_v33 = vld [vmem:[%s4465_s4 + $0x98] sm:$0xf] }
  0x16   :  { %v115_v34 = vld [vmem:[%s4465_s4 + $0x8c] sm:$0xf]  ;;  %112 = vst [vmem:[#allocation2 + $0x90] sm:$0xf] %v111_v32  ;;  %114 = vst [vmem:[#allocation2 + $0x94] sm:$0xf] %v113_v33 }
  0x17   :  { %116 = vst [vmem:[#allocation2 + $0x98] sm:$0xf] %v115_v34  ;;  %v121_v36 = vld [vmem:[%s4465_s4 + $0xb0] sm:$0xf]  ;;  %v123_v37 = vld [vmem:[%s4465_s4 + $0xa4] sm:$0xf] }
  0x18   :  { %118 = vst [vmem:[#allocation2 + $0x9c] sm:$0xff] %v117_v35   ;;  %122 = vst [vmem:[#allocation2 + $0xa4] sm:$0xf] %v121_v36  ;;  %v125_v38 = vld [vmem:[%s4465_s4 + $0xb4] sm:$0xf]  ;;  %v133_v42 = vld [vmem:[%s4465_s4 + $0xbc] sm:$0xff]  }
  0x19   :  { %124 = vst [vmem:[#allocation2 + $0xa8] sm:$0xf] %v123_v37  ;;  %v127_v39 = vld [vmem:[%s4465_s4 + $0xa8] sm:$0xf]  ;;  %v129_v40 = vld [vmem:[%s4465_s4 + $0xb8] sm:$0xf] }
  0x1a   :  { %126 = vst [vmem:[#allocation2 + $0xac] sm:$0xf] %v125_v38  ;;  %128 = vst [vmem:[#allocation2 + $0xb0] sm:$0xf] %v127_v39  ;;  %v131_v41 = vld [vmem:[%s4465_s4 + $0xac] sm:$0xf] }
  0x1b   :  { %130 = vst [vmem:[#allocation2 + $0xb4] sm:$0xf] %v129_v40  ;;  %v137_v43 = vld [vmem:[%s4465_s4 + $0xd0] sm:$0xf]  ;;  %132 = vst [vmem:[#allocation2 + $0xb8] sm:$0xf] %v131_v41 }
  0x1c   :  { %134 = vst [vmem:[#allocation2 + $0xbc] sm:$0xff] %v133_v42   ;;  %138 = vst [vmem:[#allocation2 + $0xc4] sm:$0xf] %v137_v43  ;;  %v139_v44 = vld [vmem:[%s4465_s4 + $0xc4] sm:$0xf]  ;;  %v149_v49 = vld [vmem:[%s4465_s4 + $0xdc] sm:$0xff]  }
  0x1d   :  { %v141_v45 = vld [vmem:[%s4465_s4 + $0xd4] sm:$0xf]  ;;  %v143_v46 = vld [vmem:[%s4465_s4 + $0xc8] sm:$0xf]  ;;  %140 = vst [vmem:[#allocation2 + $0xc8] sm:$0xf] %v139_v44 }
  0x1e   :  { %142 = vst [vmem:[#allocation2 + $0xcc] sm:$0xf] %v141_v45  ;;  %144 = vst [vmem:[#allocation2 + $0xd0] sm:$0xf] %v143_v46  ;;  %v145_v47 = vld [vmem:[%s4465_s4 + $0xd8] sm:$0xf] }
  0x1f   :  { %v147_v48 = vld [vmem:[%s4465_s4 + $0xcc] sm:$0xf]  ;;  %146 = vst [vmem:[#allocation2 + $0xd4] sm:$0xf] %v145_v47  ;;  %150 = vst [vmem:[#allocation2 + $0xdc] sm:$0xff] %v149_v49  }
  0x20   :  { %148 = vst [vmem:[#allocation2 + $0xd8] sm:$0xf] %v147_v48  ;;  %v153_v50 = vld [vmem:[%s4465_s4 + $0xf0] sm:$0xf]  ;;  %v155_v51 = vld [vmem:[%s4465_s4 + $0xe4] sm:$0xf] }
  0x21   :  { %v157_v52 = vld [vmem:[%s4465_s4 + $0xf4] sm:$0xf]  ;;  %154 = vst [vmem:[#allocation2 + $0xe4] sm:$0xf] %v153_v50  ;;  %156 = vst [vmem:[#allocation2 + $0xe8] sm:$0xf] %v155_v51 }
  0x22   :  { %158 = vst [vmem:[#allocation2 + $0xec] sm:$0xf] %v157_v52  ;;  %v159_v53 = vld [vmem:[%s4465_s4 + $0xe8] sm:$0xf]  ;;  %v161_v54 = vld [vmem:[%s4465_s4 + $0xf8] sm:$0xf] }
  0x23   :  { %v163_v55 = vld [vmem:[%s4465_s4 + $0xec] sm:$0xf]  ;;  %160 = vst [vmem:[#allocation2 + $0xf0] sm:$0xf] %v159_v53  ;;  %162 = vst [vmem:[#allocation2 + $0xf4] sm:$0xf] %v161_v54 }
  0x24   :  { %164 = vst [vmem:[#allocation2 + $0xf8] sm:$0xf] %v163_v55  ;;  %v165_v56 = vld [vmem:[%s4465_s4 + $0xfc] sm:$0xf] }
  0x25   :  { %166 = vst [vmem:[#allocation2 + $0xfc] sm:$0xf] %v165_v56 }
  0x26   :  { %325 = vsyncadd [#allocation5], 4096  ;;  %v344_v57 = vld [vmem:[%s4466_s5] sm:$0xf]  ;;  %v346_v58 = vld [vmem:[%s4466_s5 + $0x8] sm:$0xf] }
  0x27   :  { %345 = vst [vmem:[#allocation3] sm:$0xf] %v344_v57  ;;  %347 = vst [vmem:[#allocation3 + $0x4] sm:$0xf] %v346_v58  ;;  %v348_v59 = vld [vmem:[%s4466_s5 + $0x4] sm:$0xf] }
  0x28   :  { %v350_v60 = vld [vmem:[%s4466_s5 + $0xc] sm:$0xff]   ;;  %v354_v61 = vld [vmem:[%s4466_s5 + $0x18] sm:$0xf]  ;;  %349 = vst [vmem:[#allocation3 + $0x8] sm:$0xf] %v348_v59  ;;  %v358_v63 = vld [vmem:[%s4466_s5 + $0x1c] sm:$0xff]  }
  0x29   :  { %351 = vst [vmem:[#allocation3 + $0xc] sm:$0xff] %v350_v60   ;;  %355 = vst [vmem:[#allocation3 + $0x14] sm:$0xf] %v354_v61  ;;  %v356_v62 = vld [vmem:[%s4466_s5 + $0x14] sm:$0xf]  ;;  %v366_v2 = vld [vmem:[%s4466_s5 + $0x2c] sm:$0xff]  }
  0x2a   :  { %v362_v0 = vld [vmem:[%s4466_s5 + $0x28] sm:$0xf]  ;;  %357 = vst [vmem:[#allocation3 + $0x18] sm:$0xf] %v356_v62  ;;  %359 = vst [vmem:[#allocation3 + $0x1c] sm:$0xff] %v358_v63   ;;  %v374_v5 = vld [vmem:[%s4466_s5 + $0x3c] sm:$0xff]  }
  0x2b   :  { %363 = vst [vmem:[#allocation3 + $0x24] sm:$0xf] %v362_v0  ;;  %v364_v1 = vld [vmem:[%s4466_s5 + $0x24] sm:$0xf]  ;;  %v370_v3 = vld [vmem:[%s4466_s5 + $0x38] sm:$0xf] }
  0x2c   :  { %365 = vst [vmem:[#allocation3 + $0x28] sm:$0xf] %v364_v1  ;;  %367 = vst [vmem:[#allocation3 + $0x2c] sm:$0xff] %v366_v2   ;;  %v372_v4 = vld [vmem:[%s4466_s5 + $0x34] sm:$0xf]  ;;  %v382_v8 = vld [vmem:[%s4466_s5 + $0x4c] sm:$0xff]  }
  0x2d   :  { %371 = vst [vmem:[#allocation3 + $0x34] sm:$0xf] %v370_v3  ;;  %v378_v6 = vld [vmem:[%s4466_s5 + $0x48] sm:$0xf]  ;;  %373 = vst [vmem:[#allocation3 + $0x38] sm:$0xf] %v372_v4 }
  0x2e   :  { %375 = vst [vmem:[#allocation3 + $0x3c] sm:$0xff] %v374_v5   ;;  %379 = vst [vmem:[#allocation3 + $0x44] sm:$0xf] %v378_v6  ;;  %v380_v7 = vld [vmem:[%s4466_s5 + $0x44] sm:$0xf]  ;;  %v390_v11 = vld [vmem:[%s4466_s5 + $0x5c] sm:$0xff]  }
  0x2f   :  { %v386_v9 = vld [vmem:[%s4466_s5 + $0x58] sm:$0xf]  ;;  %381 = vst [vmem:[#allocation3 + $0x48] sm:$0xf] %v380_v7  ;;  %383 = vst [vmem:[#allocation3 + $0x4c] sm:$0xff] %v382_v8   ;;  %v398_v14 = vld [vmem:[%s4466_s5 + $0x6c] sm:$0xff]  }
  0x30   :  { %387 = vst [vmem:[#allocation3 + $0x54] sm:$0xf] %v386_v9  ;;  %v388_v10 = vld [vmem:[%s4466_s5 + $0x54] sm:$0xf]  ;;  %v394_v12 = vld [vmem:[%s4466_s5 + $0x68] sm:$0xf] }
  0x31   :  { %389 = vst [vmem:[#allocation3 + $0x58] sm:$0xf] %v388_v10  ;;  %391 = vst [vmem:[#allocation3 + $0x5c] sm:$0xff] %v390_v11   ;;  %v396_v13 = vld [vmem:[%s4466_s5 + $0x64] sm:$0xf]  ;;  %v406_v17 = vld [vmem:[%s4466_s5 + $0x7c] sm:$0xff]  }
  0x32   :  { %395 = vst [vmem:[#allocation3 + $0x64] sm:$0xf] %v394_v12  ;;  %v402_v15 = vld [vmem:[%s4466_s5 + $0x78] sm:$0xf]  ;;  %397 = vst [vmem:[#allocation3 + $0x68] sm:$0xf] %v396_v13 }
  0x33   :  { %399 = vst [vmem:[#allocation3 + $0x6c] sm:$0xff] %v398_v14   ;;  %403 = vst [vmem:[#allocation3 + $0x74] sm:$0xf] %v402_v15  ;;  %v404_v16 = vld [vmem:[%s4466_s5 + $0x74] sm:$0xf]  ;;  %v414_v20 = vld [vmem:[%s4466_s5 + $0x8c] sm:$0xff]  }
  0x34   :  { %v410_v18 = vld [vmem:[%s4466_s5 + $0x88] sm:$0xf]  ;;  %405 = vst [vmem:[#allocation3 + $0x78] sm:$0xf] %v404_v16  ;;  %407 = vst [vmem:[#allocation3 + $0x7c] sm:$0xff] %v406_v17   ;;  %v422_v23 = vld [vmem:[%s4466_s5 + $0x9c] sm:$0xff]  }
  0x35   :  { %411 = vst [vmem:[#allocation3 + $0x84] sm:$0xf] %v410_v18  ;;  %v412_v19 = vld [vmem:[%s4466_s5 + $0x84] sm:$0xf]  ;;  %v418_v21 = vld [vmem:[%s4466_s5 + $0x98] sm:$0xf] }
  0x36   :  { %413 = vst [vmem:[#allocation3 + $0x88] sm:$0xf] %v412_v19  ;;  %415 = vst [vmem:[#allocation3 + $0x8c] sm:$0xff] %v414_v20   ;;  %v420_v22 = vld [vmem:[%s4466_s5 + $0x94] sm:$0xf]  ;;  %v430_v26 = vld [vmem:[%s4466_s5 + $0xac] sm:$0xff]  }
  0x37   :  { %419 = vst [vmem:[#allocation3 + $0x94] sm:$0xf] %v418_v21  ;;  %v426_v24 = vld [vmem:[%s4466_s5 + $0xa8] sm:$0xf]  ;;  %421 = vst [vmem:[#allocation3 + $0x98] sm:$0xf] %v420_v22 }
  0x38   :  { %423 = vst [vmem:[#allocation3 + $0x9c] sm:$0xff] %v422_v23   ;;  %427 = vst [vmem:[#allocation3 + $0xa4] sm:$0xf] %v426_v24  ;;  %v428_v25 = vld [vmem:[%s4466_s5 + $0xa4] sm:$0xf]  ;;  %v438_v29 = vld [vmem:[%s4466_s5 + $0xbc] sm:$0xff]  }
  0x39   :  { %v434_v27 = vld [vmem:[%s4466_s5 + $0xb8] sm:$0xf]  ;;  %429 = vst [vmem:[#allocation3 + $0xa8] sm:$0xf] %v428_v25  ;;  %431 = vst [vmem:[#allocation3 + $0xac] sm:$0xff] %v430_v26   ;;  %v446_v32 = vld [vmem:[%s4466_s5 + $0xcc] sm:$0xff]  }
  0x3a   :  { %435 = vst [vmem:[#allocation3 + $0xb4] sm:$0xf] %v434_v27  ;;  %v436_v28 = vld [vmem:[%s4466_s5 + $0xb4] sm:$0xf]  ;;  %v442_v30 = vld [vmem:[%s4466_s5 + $0xc8] sm:$0xf] }
  0x3b   :  { %437 = vst [vmem:[#allocation3 + $0xb8] sm:$0xf] %v436_v28  ;;  %439 = vst [vmem:[#allocation3 + $0xbc] sm:$0xff] %v438_v29   ;;  %v444_v31 = vld [vmem:[%s4466_s5 + $0xc4] sm:$0xf]  ;;  %v454_v35 = vld [vmem:[%s4466_s5 + $0xdc] sm:$0xff]  }
  0x3c   :  { %443 = vst [vmem:[#allocation3 + $0xc4] sm:$0xf] %v442_v30  ;;  %v450_v33 = vld [vmem:[%s4466_s5 + $0xd8] sm:$0xf]  ;;  %445 = vst [vmem:[#allocation3 + $0xc8] sm:$0xf] %v444_v31 }
  0x3d   :  { %447 = vst [vmem:[#allocation3 + $0xcc] sm:$0xff] %v446_v32   ;;  %451 = vst [vmem:[#allocation3 + $0xd4] sm:$0xf] %v450_v33  ;;  %v452_v34 = vld [vmem:[%s4466_s5 + $0xd4] sm:$0xf]  ;;  %v462_v38 = vld [vmem:[%s4466_s5 + $0xec] sm:$0xff]  }
  0x3e   :  { %v458_v36 = vld [vmem:[%s4466_s5 + $0xe8] sm:$0xf]  ;;  %453 = vst [vmem:[#allocation3 + $0xd8] sm:$0xf] %v452_v34  ;;  %455 = vst [vmem:[#allocation3 + $0xdc] sm:$0xff] %v454_v35   ;;  %v470_v41 = vld [vmem:[%s4466_s5 + $0xfc] sm:$0xff]  }
  0x3f   :  { %459 = vst [vmem:[#allocation3 + $0xe4] sm:$0xf] %v458_v36  ;;  %v460_v37 = vld [vmem:[%s4466_s5 + $0xe4] sm:$0xf]  ;;  %v466_v39 = vld [vmem:[%s4466_s5 + $0xf8] sm:$0xf] }
  0x40   :  { %461 = vst [vmem:[#allocation3 + $0xe8] sm:$0xf] %v460_v37  ;;  %463 = vst [vmem:[#allocation3 + $0xec] sm:$0xff] %v462_v38   ;;  %v468_v40 = vld [vmem:[%s4466_s5 + $0xf4] sm:$0xf]  ;;  %v478_v44 = vld [vmem:[%s4466_s5 + $0x10c] sm:$0xff]  }
  0x41   :  { %467 = vst [vmem:[#allocation3 + $0xf4] sm:$0xf] %v466_v39  ;;  %v474_v42 = vld [vmem:[%s4466_s5 + $0x108] sm:$0xf]  ;;  %469 = vst [vmem:[#allocation3 + $0xf8] sm:$0xf] %v468_v40 }
  0x42   :  { %471 = vst [vmem:[#allocation3 + $0xfc] sm:$0xff] %v470_v41   ;;  %475 = vst [vmem:[#allocation3 + $0x104] sm:$0xf] %v474_v42  ;;  %v476_v43 = vld [vmem:[%s4466_s5 + $0x104] sm:$0xf]  ;;  %v486_v47 = vld [vmem:[%s4466_s5 + $0x11c] sm:$0xff]  }
  0x43   :  { %v482_v45 = vld [vmem:[%s4466_s5 + $0x118] sm:$0xf]  ;;  %477 = vst [vmem:[#allocation3 + $0x108] sm:$0xf] %v476_v43  ;;  %479 = vst [vmem:[#allocation3 + $0x10c] sm:$0xff] %v478_v44   ;;  %v494_v50 = vld [vmem:[%s4466_s5 + $0x12c] sm:$0xff]  }
  0x44   :  { %483 = vst [vmem:[#allocation3 + $0x114] sm:$0xf] %v482_v45  ;;  %v484_v46 = vld [vmem:[%s4466_s5 + $0x114] sm:$0xf]  ;;  %v490_v48 = vld [vmem:[%s4466_s5 + $0x128] sm:$0xf] }
  0x45   :  { %485 = vst [vmem:[#allocation3 + $0x118] sm:$0xf] %v484_v46  ;;  %487 = vst [vmem:[#allocation3 + $0x11c] sm:$0xff] %v486_v47   ;;  %v492_v49 = vld [vmem:[%s4466_s5 + $0x124] sm:$0xf]  ;;  %v502_v53 = vld [vmem:[%s4466_s5 + $0x13c] sm:$0xff]  }
  0x46   :  { %491 = vst [vmem:[#allocation3 + $0x124] sm:$0xf] %v490_v48  ;;  %v498_v51 = vld [vmem:[%s4466_s5 + $0x138] sm:$0xf]  ;;  %493 = vst [vmem:[#allocation3 + $0x128] sm:$0xf] %v492_v49 }
  0x47   :  { %495 = vst [vmem:[#allocation3 + $0x12c] sm:$0xff] %v494_v50   ;;  %499 = vst [vmem:[#allocation3 + $0x134] sm:$0xf] %v498_v51  ;;  %v500_v52 = vld [vmem:[%s4466_s5 + $0x134] sm:$0xf]  ;;  %v510_v56 = vld [vmem:[%s4466_s5 + $0x14c] sm:$0xff]  }
  0x48   :  { %v506_v54 = vld [vmem:[%s4466_s5 + $0x148] sm:$0xf]  ;;  %501 = vst [vmem:[#allocation3 + $0x138] sm:$0xf] %v500_v52  ;;  %503 = vst [vmem:[#allocation3 + $0x13c] sm:$0xff] %v502_v53   ;;  %v518_v59 = vld [vmem:[%s4466_s5 + $0x15c] sm:$0xff]  }
  0x49   :  { %507 = vst [vmem:[#allocation3 + $0x144] sm:$0xf] %v506_v54  ;;  %v508_v55 = vld [vmem:[%s4466_s5 + $0x144] sm:$0xf]  ;;  %v514_v57 = vld [vmem:[%s4466_s5 + $0x158] sm:$0xf] }
  0x4a   :  { %509 = vst [vmem:[#allocation3 + $0x148] sm:$0xf] %v508_v55  ;;  %511 = vst [vmem:[#allocation3 + $0x14c] sm:$0xff] %v510_v56   ;;  %v516_v58 = vld [vmem:[%s4466_s5 + $0x154] sm:$0xf]  ;;  %v526_v62 = vld [vmem:[%s4466_s5 + $0x16c] sm:$0xff]  }
  0x4b   :  { %515 = vst [vmem:[#allocation3 + $0x154] sm:$0xf] %v514_v57  ;;  %v522_v60 = vld [vmem:[%s4466_s5 + $0x168] sm:$0xf]  ;;  %517 = vst [vmem:[#allocation3 + $0x158] sm:$0xf] %v516_v58 }
  0x4c   :  { %519 = vst [vmem:[#allocation3 + $0x15c] sm:$0xff] %v518_v59   ;;  %523 = vst [vmem:[#allocation3 + $0x164] sm:$0xf] %v522_v60  ;;  %v524_v61 = vld [vmem:[%s4466_s5 + $0x164] sm:$0xf]  ;;  %v534_v1 = vld [vmem:[%s4466_s5 + $0x17c] sm:$0xff]  }
  0x4d   :  { %v530_v63 = vld [vmem:[%s4466_s5 + $0x178] sm:$0xf]  ;;  %525 = vst [vmem:[#allocation3 + $0x168] sm:$0xf] %v524_v61  ;;  %527 = vst [vmem:[#allocation3 + $0x16c] sm:$0xff] %v526_v62   ;;  %v542_v4 = vld [vmem:[%s4466_s5 + $0x18c] sm:$0xff]  }
  0x4e   :  { %531 = vst [vmem:[#allocation3 + $0x174] sm:$0xf] %v530_v63  ;;  %v532_v0 = vld [vmem:[%s4466_s5 + $0x174] sm:$0xf]  ;;  %v538_v2 = vld [vmem:[%s4466_s5 + $0x188] sm:$0xf] }
  0x4f   :  { %533 = vst [vmem:[#allocation3 + $0x178] sm:$0xf] %v532_v0  ;;  %535 = vst [vmem:[#allocation3 + $0x17c] sm:$0xff] %v534_v1   ;;  %v540_v3 = vld [vmem:[%s4466_s5 + $0x184] sm:$0xf]  ;;  %v550_v7 = vld [vmem:[%s4466_s5 + $0x19c] sm:$0xff]  }
  0x50   :  { %539 = vst [vmem:[#allocation3 + $0x184] sm:$0xf] %v538_v2  ;;  %v546_v5 = vld [vmem:[%s4466_s5 + $0x198] sm:$0xf]  ;;  %541 = vst [vmem:[#allocation3 + $0x188] sm:$0xf] %v540_v3 }
  0x51   :  { %543 = vst [vmem:[#allocation3 + $0x18c] sm:$0xff] %v542_v4   ;;  %547 = vst [vmem:[#allocation3 + $0x194] sm:$0xf] %v546_v5  ;;  %v548_v6 = vld [vmem:[%s4466_s5 + $0x194] sm:$0xf]  ;;  %v558_v10 = vld [vmem:[%s4466_s5 + $0x1ac] sm:$0xff]  }
  0x52   :  { %v554_v8 = vld [vmem:[%s4466_s5 + $0x1a8] sm:$0xf]  ;;  %549 = vst [vmem:[#allocation3 + $0x198] sm:$0xf] %v548_v6  ;;  %551 = vst [vmem:[#allocation3 + $0x19c] sm:$0xff] %v550_v7   ;;  %v566_v13 = vld [vmem:[%s4466_s5 + $0x1bc] sm:$0xff]  }
  0x53   :  { %555 = vst [vmem:[#allocation3 + $0x1a4] sm:$0xf] %v554_v8  ;;  %v556_v9 = vld [vmem:[%s4466_s5 + $0x1a4] sm:$0xf]  ;;  %v562_v11 = vld [vmem:[%s4466_s5 + $0x1b8] sm:$0xf] }
  0x54   :  { %557 = vst [vmem:[#allocation3 + $0x1a8] sm:$0xf] %v556_v9  ;;  %559 = vst [vmem:[#allocation3 + $0x1ac] sm:$0xff] %v558_v10   ;;  %v564_v12 = vld [vmem:[%s4466_s5 + $0x1b4] sm:$0xf]  ;;  %v574_v16 = vld [vmem:[%s4466_s5 + $0x1cc] sm:$0xff]  }
  0x55   :  { %563 = vst [vmem:[#allocation3 + $0x1b4] sm:$0xf] %v562_v11  ;;  %v570_v14 = vld [vmem:[%s4466_s5 + $0x1c8] sm:$0xf]  ;;  %565 = vst [vmem:[#allocation3 + $0x1b8] sm:$0xf] %v564_v12 }
  0x56   :  { %567 = vst [vmem:[#allocation3 + $0x1bc] sm:$0xff] %v566_v13   ;;  %571 = vst [vmem:[#allocation3 + $0x1c4] sm:$0xf] %v570_v14  ;;  %v572_v15 = vld [vmem:[%s4466_s5 + $0x1c4] sm:$0xf]  ;;  %v582_v19 = vld [vmem:[%s4466_s5 + $0x1dc] sm:$0xff]  }
  0x57   :  { %v578_v17 = vld [vmem:[%s4466_s5 + $0x1d8] sm:$0xf]  ;;  %573 = vst [vmem:[#allocation3 + $0x1c8] sm:$0xf] %v572_v15  ;;  %575 = vst [vmem:[#allocation3 + $0x1cc] sm:$0xff] %v574_v16   ;;  %v590_v22 = vld [vmem:[%s4466_s5 + $0x1ec] sm:$0xff]  }
  0x58   :  { %579 = vst [vmem:[#allocation3 + $0x1d4] sm:$0xf] %v578_v17  ;;  %v580_v18 = vld [vmem:[%s4466_s5 + $0x1d4] sm:$0xf]  ;;  %v586_v20 = vld [vmem:[%s4466_s5 + $0x1e8] sm:$0xf] }
  0x59   :  { %581 = vst [vmem:[#allocation3 + $0x1d8] sm:$0xf] %v580_v18  ;;  %583 = vst [vmem:[#allocation3 + $0x1dc] sm:$0xff] %v582_v19   ;;  %v588_v21 = vld [vmem:[%s4466_s5 + $0x1e4] sm:$0xf] }
  0x5a   :  { %587 = vst [vmem:[#allocation3 + $0x1e4] sm:$0xf] %v586_v20  ;;  %v594_v23 = vld [vmem:[%s4466_s5 + $0x1f8] sm:$0xf]  ;;  %589 = vst [vmem:[#allocation3 + $0x1e8] sm:$0xf] %v588_v21 }
  0x5b   :  { %591 = vst [vmem:[#allocation3 + $0x1ec] sm:$0xff] %v590_v22   ;;  %595 = vst [vmem:[#allocation3 + $0x1f4] sm:$0xf] %v594_v23  ;;  %v596_v24 = vld [vmem:[%s4466_s5 + $0x1f4] sm:$0xf] }
  0x5c   :  { %v598_v25 = vld [vmem:[%s4466_s5 + $0x1fc] sm:$0xf]  ;;  %597 = vst [vmem:[#allocation3 + $0x1f8] sm:$0xf] %v596_v24 }
  0x5d   :  { %599 = vst [vmem:[#allocation3 + $0x1fc] sm:$0xf] %v598_v25 }
  0x5e   :  { %886 = vsyncadd [#allocation5 + $0x1], 8192  ;;  %v3877_v26 = vld [vmem:[%s4467_s6] sm:$0xff]  ;;  %v3882_v27 = vld [vmem:[%s4467_s6 + $0x8] sm:$0xff] }
  0x5f   :  { %v3887_v28 = vld [vmem:[%s4467_s6 + $0x10] sm:$0xff]  ;;  %v3892_v29 = vld [vmem:[%s4467_s6 + $0x18] sm:$0xff]  ;;  %v3897_v30 = vld [vmem:[%s4467_s6 + $0x20] sm:$0xff] }
  0x60   :  { %v3902_v31 = vld [vmem:[%s4467_s6 + $0x28] sm:$0xff]  ;;  %v3907_v32 = vld [vmem:[%s4467_s6 + $0x30] sm:$0xff]  ;;  %v3912_v33 = vld [vmem:[%s4467_s6 + $0x38] sm:$0xff] }
  0x61   :  { %v3917_v34 = vld [vmem:[%s4467_s6 + $0x40] sm:$0xff]  ;;  %v3922_v35 = vld [vmem:[%s4467_s6 + $0x48] sm:$0xff]  ;;  %v3927_v36 = vld [vmem:[%s4467_s6 + $0x50] sm:$0xff] }
  0x62   :  { %v3932_v37 = vld [vmem:[%s4467_s6 + $0x58] sm:$0xff]  ;;  %v3937_v38 = vld [vmem:[%s4467_s6 + $0x60] sm:$0xff]  ;;  %v3942_v39 = vld [vmem:[%s4467_s6 + $0x68] sm:$0xff] }
  0x63   :  { %v3947_v40 = vld [vmem:[%s4467_s6 + $0x70] sm:$0xff]  ;;  %v3952_v41 = vld [vmem:[%s4467_s6 + $0x78] sm:$0xff]  ;;  %v3957_v42 = vld [vmem:[%s4467_s6 + $0x80] sm:$0xff] }
  0x64   :  { %v3962_v43 = vld [vmem:[%s4467_s6 + $0x88] sm:$0xff]  ;;  %v3967_v44 = vld [vmem:[%s4467_s6 + $0x90] sm:$0xff]  ;;  %v3972_v45 = vld [vmem:[%s4467_s6 + $0x98] sm:$0xff] }
  0x65   :  { %v3977_v46 = vld [vmem:[%s4467_s6 + $0xa0] sm:$0xff]  ;;  %v3982_v47 = vld [vmem:[%s4467_s6 + $0xa8] sm:$0xff]  ;;  %v3987_v48 = vld [vmem:[%s4467_s6 + $0xb0] sm:$0xff] }
  0x66   :  { %v3992_v49 = vld [vmem:[%s4467_s6 + $0xb8] sm:$0xff]  ;;  %v3997_v50 = vld [vmem:[%s4467_s6 + $0xc0] sm:$0xff]  ;;  %v4002_v51 = vld [vmem:[%s4467_s6 + $0xc8] sm:$0xff] }
  0x67   :  { %v4007_v52 = vld [vmem:[%s4467_s6 + $0xd0] sm:$0xff]  ;;  %v4012_v53 = vld [vmem:[%s4467_s6 + $0xd8] sm:$0xff]  ;;  %v4017_v54 = vld [vmem:[%s4467_s6 + $0xe0] sm:$0xff] }
  0x68   :  { %v4022_v55 = vld [vmem:[%s4467_s6 + $0xe8] sm:$0xff]  ;;  %v4027_v56 = vld [vmem:[%s4467_s6 + $0xf0] sm:$0xff]  ;;  %v4032_v57 = vld [vmem:[%s4467_s6 + $0xf8] sm:$0xff] }
  0x69   :  { %991 = vsyncadd [#allocation5 + $0x2], 4096  ;;  %v4037_v58 = vld [vmem:[%s4464_s3 + $0x1] sm:$0xf]  ;;  %v4042_v59 = vld [vmem:[%s4464_s3 + $0x5] sm:$0x3] }
  0x6a   :  { %v4047_v60 = vld [vmem:[%s4464_s3 + $0x7] ss:$0 sm:$0xff]  ;;  %v3264_v63 = vld [vmem:[%s4462_s1 + $0x48] sm:$0xff]   ;;  %v3363_v1 = vmov 0.0|0.0   ;;  %v3266_v2 = vld [vmem:[%s4462_s1 + $0x50] sm:$0xff]   ;;  %vm3364_vm0 = vmmov 0  }
  0x6b   :  { %v3262_v61 = vld [vmem:[%s4462_s1 + $0x40] sm:$0xff]   ;;  %v3265_v0 = vld [vmem:[%s4462_s1 + $0x8] sm:$0xff]   ;;  %3070 = vmatprep.subr.bf16.mxu1 %v3363_v1  ;;  %v3365_v3 = vmov 0.0   ;;  %v3267_v4 = vld [vmem:[%s4462_s1 + $0x10] sm:$0xff]   ;;  %vm1140_vm1 = vcmask 998400   ;;  %vm1144_vm2 = vcmask 1044480  }
  0x6c   :  { %v3263_v62 = vld [vmem:[%s4462_s1] sm:$0xff]   ;;  %2549 = vmatprep.subr.bf16.mxu0 %v3262_v61  ;;  %2844 = vmatprep.mubr.msk.f32.mxu1 %vm3364_vm0, %v3365_v3  ;;  %v3268_v5 = vld [vmem:[%s4462_s1 + $0x58] sm:$0xff]   ;;  %v3272_v9 = vld [vmem:[%s4462_s1 + $0x68] sm:$0xff]   ;;  %s3368_s9 = smov 96   ;;  %s3369_s10 = smov 64  }
  0x6d   :  { %2550 = vmatpush3.bf16.msra.mxu0 %v3263_v62  ;;  %v3269_v6 = vld [vmem:[%s4462_s1 + $0x18] sm:$0xff]   ;;  %v3270_v7 = vld [vmem:[%s4462_s1 + $0x60] sm:$0xff]   ;;  %v1190_v12 = vld [vmem:[%s4463_s2 + $0x8] sm:$0xff] }
  0x6e   :  { %2551 = vmatprep.subr.bf16.mxu0 %v3264_v63  ;;  %v3271_v8 = vld [vmem:[%s4462_s1 + $0x20] sm:$0xff]   ;;  %v3273_v14 = vld [vmem:[%s4462_s1 + $0x28] sm:$0xff]   ;;  %v1191_v15 = vld [vmem:[%s4463_s2 + $0x10] sm:$0xff] }
  0x6f   :  { %v3280_v10 = vld [vmem:[%s4461_s0 + $0x4] ss:$8 sps:$4 sm:$0xff]   ;;  %v1192_v16 = vld [vmem:[%s4463_s2 + $0x18] sm:$0xff]  ;;  %v3274_v17 = vld [vmem:[%s4462_s1 + $0x70] sm:$0xff]  }
  0x70   :  { %v1189_v11 = vld [vmem:[%s4463_s2] sm:$0xff]  ;;  %2536 = vmatprep.mubr.msk.bf16.mxu0 %vm1140_vm1, %v3280_v10  ;;  %v4110_v18 = vpack.c.bf16 %v1192_v16, %v1191_v15  ;;  %v3275_v19 = vld [vmem:[%s4462_s1 + $0x30] sm:$0xff]   ;;  %v1194_v21 = vld [vmem:[%s4463_s2 + $0x28] sm:$0xff] }
  0x71   :  { %2552 = vmatpush3.bf16.msra.mxu0 %v3265_v0  ;;  %v4094_v13 = vpack.c.bf16 %v1190_v12, %v1189_v11  ;;  %v1193_v20 = vld [vmem:[%s4463_s2 + $0x20] sm:$0xff]  ;;  %v3276_v22 = vld [vmem:[%s4462_s1 + $0x78] sm:$0x1f]   ;;  %v1195_v25 = vld [vmem:[%s4463_s2 + $0x30] sm:$0xff] }
  0x72   :  { %2553 = vmatprep.subr.bf16.mxu0 %v3266_v2  ;;  %v4126_v23 = vpack.c.bf16 %v1194_v21, %v1193_v20  ;;  %v3277_v24 = vld [vmem:[%s4462_s1 + $0x38] sm:$0xff]   ;;  %v3278_v62 = vld [vmem:[%s4461_s0] ss:$8 sps:$4 sm:$0xff]   ;;  %v1203_v11 = vld [vmem:[%s4463_s2 + $0x70] sm:$0xff] }
  0x73   :  { %3072 = vmatpush3.bf16.msra.mxu1 %v4094_v13  ;;  %v1196_v61 = vld [vmem:[%s4463_s2 + $0x38] sm:$0xff]  ;;  %v1197_v0 = vld [vmem:[%s4463_s2 + $0x40] sm:$0xff]  ;;  %v1198_v2 = vld [vmem:[%s4463_s2 + $0x48] sm:$0xff] }
  0x74   :  { %3073 = vmatprep.subr.bf16.mxu1 %v3363_v1  ;;  %v4142_v63 = vpack.c.bf16 %v1196_v61, %v1195_v25  ;;  %v1204_v12 = vld [vmem:[%s4463_s2 + $0x78] sm:$0xff] }
  0x75   :  { %2554 = vmatpush3.bf16.msra.mxu0 %v3267_v4  ;;  %v4153_v4 = vpack.c.bf16 %v1198_v2, %v1197_v0 }
  0x76   :  { %2555 = vmatprep.subr.bf16.mxu0 %v3268_v5  ;;  %v1199_v5 = vld [vmem:[%s4463_s2 + $0x50] sm:$0xff] }
  0x77   :  { %3075 = vmatpush3.bf16.msra.mxu1 %v4110_v18 }
  0x78   :  { %3076 = vmatprep.subr.bf16.mxu1 %v3363_v1 }
  0x79   :  { %2556 = vmatpush3.bf16.msra.mxu0 %v3269_v6  ;;  %v1200_v6 = vld [vmem:[%s4463_s2 + $0x58] sm:$0xff] }
  0x7a   :  { %2557 = vmatprep.subr.bf16.mxu0 %v3270_v7  ;;  %v4167_v7 = vpack.c.bf16 %v1200_v6, %v1199_v5  ;;  %v1205_v5 = vlaneseq }
  0x7b   :  { %3078 = vmatpush3.bf16.msra.mxu1 %v4126_v23 }
  0x7c   :  { %3079 = vmatprep.subr.bf16.mxu1 %v3363_v1 }
  0x7d   :  { %2558 = vmatpush3.bf16.msra.mxu0 %v3271_v8  ;;  %v1201_v8 = vld [vmem:[%s4463_s2 + $0x60] sm:$0xff] }
  0x7e   :  { %2559 = vmatprep.subr.bf16.mxu0 %v3272_v9  ;;  %v1202_v9 = vld [vmem:[%s4463_s2 + $0x68] sm:$0xff] }
  0x7f   :  { %3081 = vmatpush3.bf16.msra.mxu1 %v4142_v63  ;;  %v4179_v10 = vpack.c.bf16 %v1202_v9, %v1201_v8  ;;  %v1206_v9 = vand.u32 127, %v1205_v5 }
  0x80   :  { %3082 = vmatprep.subr.bf16.mxu1 %v3363_v1 }
  0x81   :  { %2560 = vmatpush3.bf16.msra.mxu0 %v3273_v14  ;;  %v4191_v14 = vpack.c.bf16 %v1204_v12, %v1203_v11  ;;  %vm1207_vm3 = vcmp.ge.s32.totalorder %v1206_v9, 64  ;;  %vm1208_vm4 = vcmp.lt.s32.totalorder %v1206_v9, 96  ;;  %v3366_v11 = vmov 1.0  }
  0x82   :  { %2561 = vmatprep.subr.bf16.mxu0 %v3274_v17  ;;  %vm1209_vm5 = vmand %vm1207_vm3, %vm1208_vm4 }
  0x83   :  { %3084 = vmatpush3.bf16.msra.mxu1 %v4153_v4  ;;  %v4233_v12 = vsel %vm1209_vm5, 2.0, %v3366_v11 }
  0x84   :  { %3085 = vmatprep.subr.bf16.mxu1 %v3363_v1 }
  0x85   :  { %2562 = vmatpush3.bf16.msra.mxu0 %v3275_v19 }
  0x86   :  { %3252 = vmatprep.subr.msk.bf16.mxu0 %vm1144_vm2, %v3276_v22  ;;  %v2517_v22 = vld [vmem:[%s4464_s3] ss:$0 sm:$0xff]  ;;  %s3367_s3 = smov 32  }
  0x87   :  { %3087 = vmatpush3.bf16.msra.mxu1 %v4167_v7 }
  0x88   :  { %3088 = vmatprep.subr.bf16.mxu1 %v3363_v1 }
  0x89   :  { %2564 = vmatpush3.bf16.msra.mxu0 %v3277_v24 }
  0x8a   :  { %3022 = vmatprep.subr.bf16.mxu0 %v3363_v1 }
  0x8b   :  { %3090 = vmatpush3.bf16.msra.mxu1 %v4179_v10 }
  0x8c   :  { %1181 = vmatmul.mubr.bf16.vlgmr.msra.gmra.mrb[0].mxu0 %v3278_v62  ;;  %3091 = vmatprep.subr.bf16.mxu1 %v3363_v1 }
  0x8d   :  { %3024 = vmatpush3.bf16.msra.mxu0 %v4094_v13  ;;  %2774 = vmatprep.mubr.msk.f32.mxu0 %vm3364_vm0, %v3365_v3 }
  0x8e   :  { %3025 = vmatprep.subr.bf16.mxu0 %v3363_v1 }
  0x8f   :  { %3093 = vmatpush3.bf16.msra.mxu1 %v4191_v14 }
  0x90   :  { %3118 = vmatprep.subr.bf16.mxu1 %v3363_v1 }
  0x91   :  { %3027 = vmatpush3.bf16.msra.mxu0 %v4110_v18 }
  0x92   :  { %3028 = vmatprep.subr.bf16.mxu0 %v3363_v1 }
  0x95   :  { %3030 = vmatpush3.bf16.msra.mxu0 %v4126_v23 }
  0x96   :  { %3031 = vmatprep.subr.bf16.mxu0 %v3363_v1 }
  0x99   :  { %3033 = vmatpush3.bf16.msra.mxu0 %v4142_v63 }
  0x9a   :  { %3034 = vmatprep.subr.bf16.mxu0 %v3363_v1 }
  0x9d   :  { %3036 = vmatpush3.bf16.msra.mxu0 %v4153_v4 }
  0x9e   :  { %3037 = vmatprep.subr.bf16.mxu0 %v3363_v1 }
  0xa1   :  { %3039 = vmatpush3.bf16.msra.mxu0 %v4167_v7 }
  0xa2   :  { %3040 = vmatprep.subr.bf16.mxu0 %v3363_v1 }
  0xa5   :  { %3042 = vmatpush3.bf16.msra.mxu0 %v4179_v10 }
  0xa6   :  { %3043 = vmatprep.subr.bf16.mxu0 %v3363_v1 }
  0xa9   :  { %3045 = vmatpush3.bf16.msra.mxu0 %v4191_v14 }
  0xaa   :  { %3046 = vmatprep.subr.bf16.mxu0 %v3363_v1 }
  0xac   :  { %2775 = vmatmul.mubr.f32.vlgmr.msra.gmra.mrb[4].mxu0 %v3365_v3 }
  0xad   :  { %3048 = vmatpush3.bf16.msra.mxu0 %v4094_v13  ;;  %2809 = vmatprep.mubr.msk.f32.mxu0 %vm3364_vm0, %v3365_v3 }
  0xae   :  { %3049 = vmatprep.subr.bf16.mxu0 %v3363_v1 }
  0xb1   :  { %3051 = vmatpush3.bf16.msra.mxu0 %v4110_v18 }
  0xb2   :  { %3052 = vmatprep.subr.bf16.mxu0 %v3363_v1 }
  0xb5   :  { %3054 = vmatpush3.bf16.msra.mxu0 %v4126_v23 }
  0xb6   :  { %3055 = vmatprep.subr.bf16.mxu0 %v3363_v1 }
  0xb9   :  { %3057 = vmatpush3.bf16.msra.mxu0 %v4142_v63 }
  0xba   :  { %3058 = vmatprep.subr.bf16.mxu0 %v3363_v1 }
  0xbd   :  { %3060 = vmatpush3.bf16.msra.mxu0 %v4153_v4 }
  0xbe   :  { %3061 = vmatprep.subr.bf16.mxu0 %v3363_v1 }
  0xc1   :  { %3063 = vmatpush3.bf16.msra.mxu0 %v4167_v7 }
  0xc2   :  { %3064 = vmatprep.subr.bf16.mxu0 %v3363_v1 }
  0xc5   :  { %3066 = vmatpush3.bf16.msra.mxu0 %v4179_v10 }
  0xc6   :  { %3067 = vmatprep.subr.bf16.mxu0 %v3363_v1 }
  0xc9   :  { %3069 = vmatpush3.bf16.msra.mxu0 %v4191_v14 }
  0xca   :  { %3094 = vmatprep.subr.bf16.mxu0 %v3363_v1 }
 0x15f   :  { %v2565_v15 = vpop.f32.mrb[0].mxu0 }
 0x160   :  { %v2566_v16 = vpop.f32.mrb[1].mxu0 }
 0x161   :  { %v2567_v17 = vadd.f32 %v2566_v16, %v2565_v15  ;;  %v2568_v19 = vpop.f32.mrb[2].mxu0  ;;  %v4236_v16 = vsel %vm1209_vm5, 1.0, %v3365_v3 }
 0x162   :  { %v2569_v20 = vpop.f32.mrb[3].mxu0 }
 0x163   :  { %v2570_v21 = vadd.f32 %v2569_v20, %v2568_v19  ;;  %v4229_v25 = vadd.f32 %v2567_v17, %v2517_v22 }
 0x165   :  { %v4227_v24 = vadd.f32 %v2570_v21, %v2517_v22 }
 0x17f   :  { %v1278_v61 = vpop.f32.mrb[4].mxu0 }
 0x180   :  { %v1282_v62 = vadd.f32 %v1278_v61, %v4229_v25  ;;  %v2776_v0 = vpop.f32.mrb[5].mxu0 }
 0x182   :  { %v2537_v2 = vmul.f32 -1.442695, %v1282_v62 }
 0x184   :  { %3281 = vpow2.f32 %v2537_v2 }
 0x18e   :  { %v3282_v6 = vpop.eup %3281 }
 0x18f   :  { %v1286_v8 = vadd.f32 1.0, %v3282_v6 }
 0x191   :  { %3283 = vrcp.f32 %v1286_v8 }
 0x19b   :  { %v3284_v15 = vpop.eup %3283 }
 0x19c   :  { %v1289_v17 = vmul.f32 %v3284_v15, %v4233_v12 }
 0x19e   :  { %v1290_v19 = vsub.f32 %v1289_v17, %v4236_v16 }
 0x1a0   :  { %1295 = vrot.lane.b32.xlu1 %v1290_v19, %s3367_s3  ;;  %1291 = vrot.lane.b32.xlu0 %v1290_v19, %s3368_s9 }
 0x1a4   :  { %1293 = vrot.lane.b32.xlu0 %v1290_v19, %s3369_s10 }
 0x212   :  { %v1292_v20 = vpop.permute.xlu0 %1291  ;;  %v1296_v2 = vpop.permute.xlu1 %1295 }
 0x213   :  { %v1297_v22 = vmul.f32 0.0, %v1292_v20 }
 0x216   :  { %v1294_v21 = vpop.permute.xlu0 %1293 }
 0x217   :  { %v1298_v61 = vmul.f32 %v1294_v21, %v1290_v19 }
 0x219   :  { %v1299_v62 = vadd.f32 %v1298_v61, %v1297_v22 }
 0x21b   :  { %3285 = vtanh.f32 %v1299_v62 }
 0x225   :  { %v3286_v0 = vpop.eup %3285 }
 0x226   :  { %v1301_v6 = vmul.f32 %v3286_v0, %v1296_v2 }
 0x228   :  { %2810 = vmatmul.mubr.f32.vlgmr.msra.gmra.mrb[6].mxu0 %v1301_v6 }
 0x229   :  { %3096 = vmatpush3.bf16.msra.mxu0 %v4094_v13  ;;  %2879 = vmatprep.mubr.msk.f32.mxu0 %vm3364_vm0, %v3365_v3 }
 0x22a   :  { %3097 = vmatprep.subr.bf16.mxu0 %v3363_v1 }
 0x22d   :  { %3099 = vmatpush3.bf16.msra.mxu0 %v4110_v18 }
 0x22e   :  { %3100 = vmatprep.subr.bf16.mxu0 %v3363_v1 }
 0x231   :  { %3102 = vmatpush3.bf16.msra.mxu0 %v4126_v23 }
 0x232   :  { %3103 = vmatprep.subr.bf16.mxu0 %v3363_v1 }
 0x235   :  { %3105 = vmatpush3.bf16.msra.mxu0 %v4142_v63 }
 0x236   :  { %3106 = vmatprep.subr.bf16.mxu0 %v3363_v1 }
 0x239   :  { %3108 = vmatpush3.bf16.msra.mxu0 %v4153_v4 }
 0x23a   :  { %3109 = vmatprep.subr.bf16.mxu0 %v3363_v1 }
 0x23d   :  { %3111 = vmatpush3.bf16.msra.mxu0 %v4167_v7 }
 0x23e   :  { %3112 = vmatprep.subr.bf16.mxu0 %v3363_v1 }
 0x241   :  { %3114 = vmatpush3.bf16.msra.mxu0 %v4179_v10 }
 0x242   :  { %3115 = vmatprep.subr.bf16.mxu0 %v3363_v1 }
 0x245   :  { %3117 = vmatpush3.bf16.msra.mxu0 %v4191_v14 }
 0x246   :  { %3142 = vmatprep.subr.bf16.mxu0 %v3363_v1 }
 0x2fb   :  { %v1368_v8 = vpop.f32.mrb[6].mxu0 }
 0x2fc   :  { %v1373_v9 = vrot.slane %v1368_v8, 6  ;;  %v2811_v11 = vpop.f32.mrb[7].mxu0 }
 0x2fe   :  { %v1375_v15 = vadd.f32 %v1373_v9, %v4229_v25 }
 0x300   :  { %v2538_v17 = vmul.f32 -1.442695, %v1375_v15 }
 0x302   :  { %3287 = vpow2.f32 %v2538_v17 }
 0x30c   :  { %v3288_v19 = vpop.eup %3287 }
 0x30d   :  { %v1379_v20 = vadd.f32 1.0, %v3288_v19 }
 0x30f   :  { %3289 = vrcp.f32 %v1379_v20 }
 0x319   :  { %v3290_v21 = vpop.eup %3289 }
 0x31a   :  { %v1382_v22 = vmul.f32 %v3290_v21, %v4233_v12 }
 0x31c   :  { %v1383_v61 = vsub.f32 %v1382_v22, %v4236_v16 }
 0x31e   :  { %v1385_v0 = vrot.slane %v1383_v61, 2 }
 0x320   :  { %1387 = vrot.lane.b32.xlu0 %v1385_v0, %s3368_s9  ;;  %1389 = vrot.lane.b32.xlu1 %v1385_v0, %s3369_s10 }
 0x324   :  { %1391 = vrot.lane.b32.xlu1 %v1385_v0, %s3367_s3 }
 0x392   :  { %v1390_v2 = vpop.permute.xlu1 %1389  ;;  %v1388_v8 = vpop.permute.xlu0 %1387 }
 0x393   :  { %v1395_v6 = vrot.slane %v1390_v2, 6  ;;  %v1393_v11 = vmul.f32 %v1388_v8, %v1299_v62 }
 0x395   :  { %v1397_v9 = vmul.f32 %v1395_v6, %v1383_v61 }
 0x396   :  { %v1392_v20 = vpop.permute.xlu1 %1391 }
 0x397   :  { %v1399_v15 = vrot.slane %v1397_v9, 2 }
 0x399   :  { %v1401_v17 = vadd.f32 %v1399_v15, %v1393_v11 }
 0x39b   :  { %3291 = vtanh.f32 %v1401_v17 }
 0x3a5   :  { %v3292_v19 = vpop.eup %3291 }
 0x3a6   :  { %v1403_v21 = vmul.f32 %v3292_v19, %v1392_v20 }
 0x3a8   :  { %2845 = vmatmul.mubr.f32.vlgmr.msra.gmra.mrb[0].mxu1 %v1403_v21 }
 0x3a9   :  { %3120 = vmatpush3.bf16.msra.mxu1 %v4094_v13  ;;  %2914 = vmatprep.mubr.msk.f32.mxu1 %vm3364_vm0, %v3365_v3 }
 0x3aa   :  { %3121 = vmatprep.subr.bf16.mxu1 %v3363_v1 }
 0x3ad   :  { %3123 = vmatpush3.bf16.msra.mxu1 %v4110_v18 }
 0x3ae   :  { %3124 = vmatprep.subr.bf16.mxu1 %v3363_v1 }
 0x3b1   :  { %3126 = vmatpush3.bf16.msra.mxu1 %v4126_v23 }
 0x3b2   :  { %3127 = vmatprep.subr.bf16.mxu1 %v3363_v1 }
 0x3b5   :  { %3129 = vmatpush3.bf16.msra.mxu1 %v4142_v63 }
 0x3b6   :  { %3130 = vmatprep.subr.bf16.mxu1 %v3363_v1 }
 0x3b9   :  { %3132 = vmatpush3.bf16.msra.mxu1 %v4153_v4 }
 0x3ba   :  { %3133 = vmatprep.subr.bf16.mxu1 %v3363_v1 }
 0x3bd   :  { %3135 = vmatpush3.bf16.msra.mxu1 %v4167_v7 }
 0x3be   :  { %3136 = vmatprep.subr.bf16.mxu1 %v3363_v1 }
 0x3c1   :  { %3138 = vmatpush3.bf16.msra.mxu1 %v4179_v10 }
 0x3c2   :  { %3139 = vmatprep.subr.bf16.mxu1 %v3363_v1 }
 0x3c5   :  { %3141 = vmatpush3.bf16.msra.mxu1 %v4191_v14 }
 0x3c6   :  { %3166 = vmatprep.subr.bf16.mxu1 %v3363_v1 }
 0x47b   :  { %v1470_v62 = vpop.f32.mrb[0].mxu1 }
 0x47c   :  { %v1475_v22 = vrot.slane %v1470_v62, 4  ;;  %v2846_v61 = vpop.f32.mrb[1].mxu1 }
 0x47e   :  { %v1477_v0 = vadd.f32 %v1475_v22, %v4229_v25 }
 0x480   :  { %v2539_v2 = vmul.f32 -1.442695, %v1477_v0 }
 0x482   :  { %3293 = vpow2.f32 %v2539_v2 }
 0x48c   :  { %v3294_v6 = vpop.eup %3293 }
 0x48d   :  { %v1481_v8 = vadd.f32 1.0, %v3294_v6 }
 0x48f   :  { %3295 = vrcp.f32 %v1481_v8 }
 0x499   :  { %v3296_v9 = vpop.eup %3295 }
 0x49a   :  { %v1484_v11 = vmul.f32 %v3296_v9, %v4233_v12 }
 0x49c   :  { %v1485_v15 = vsub.f32 %v1484_v11, %v4236_v16 }
 0x49e   :  { %v1487_v19 = vrot.slane %v1485_v15, 4 }
 0x4a0   :  { %1489 = vrot.lane.b32.xlu1 %v1487_v19, %s3368_s9  ;;  %1491 = vrot.lane.b32.xlu0 %v1487_v19, %s3369_s10 }
 0x4a4   :  { %1493 = vrot.lane.b32.xlu0 %v1487_v19, %s3367_s3 }
 0x512   :  { %v1492_v20 = vpop.permute.xlu0 %1491  ;;  %v1490_v62 = vpop.permute.xlu1 %1489 }
 0x513   :  { %v1497_v21 = vrot.slane %v1492_v20, 4  ;;  %v1495_v61 = vmul.f32 %v1490_v62, %v1401_v17 }
 0x515   :  { %v1499_v22 = vmul.f32 %v1497_v21, %v1485_v15 }
 0x516   :  { %v1494_v8 = vpop.permute.xlu0 %1493 }
 0x517   :  { %v1501_v0 = vrot.slane %v1499_v22, 4 }
 0x519   :  { %v1503_v2 = vadd.f32 %v1501_v0, %v1495_v61 }
 0x51b   :  { %3297 = vtanh.f32 %v1503_v2 }
 0x525   :  { %v3298_v6 = vpop.eup %3297 }
 0x526   :  { %v1505_v9 = vmul.f32 %v3298_v6, %v1494_v8 }
 0x528   :  { %2880 = vmatmul.mubr.f32.vlgmr.msra.gmra.mrb[8].mxu0 %v1505_v9 }
 0x529   :  { %3144 = vmatpush3.bf16.msra.mxu0 %v4094_v13  ;;  %2949 = vmatprep.mubr.msk.f32.mxu0 %vm3364_vm0, %v3365_v3 }
 0x52a   :  { %3145 = vmatprep.subr.bf16.mxu0 %v3363_v1 }
 0x52d   :  { %3147 = vmatpush3.bf16.msra.mxu0 %v4110_v18 }
 0x52e   :  { %3148 = vmatprep.subr.bf16.mxu0 %v3363_v1 }
 0x531   :  { %3150 = vmatpush3.bf16.msra.mxu0 %v4126_v23 }
 0x532   :  { %3151 = vmatprep.subr.bf16.mxu0 %v3363_v1 }
 0x535   :  { %3153 = vmatpush3.bf16.msra.mxu0 %v4142_v63 }
 0x536   :  { %3154 = vmatprep.subr.bf16.mxu0 %v3363_v1 }
 0x539   :  { %3156 = vmatpush3.bf16.msra.mxu0 %v4153_v4 }
 0x53a   :  { %3157 = vmatprep.subr.bf16.mxu0 %v3363_v1 }
 0x53d   :  { %3159 = vmatpush3.bf16.msra.mxu0 %v4167_v7 }
 0x53e   :  { %3160 = vmatprep.subr.bf16.mxu0 %v3363_v1 }
 0x541   :  { %3162 = vmatpush3.bf16.msra.mxu0 %v4179_v10 }
 0x542   :  { %3163 = vmatprep.subr.bf16.mxu0 %v3363_v1 }
 0x545   :  { %3165 = vmatpush3.bf16.msra.mxu0 %v4191_v14 }
 0x546   :  { %3190 = vmatprep.subr.bf16.mxu0 %v3363_v1 }
 0x5fb   :  { %v1572_v17 = vpop.f32.mrb[8].mxu0 }
 0x5fc   :  { %v1577_v11 = vrot.slane %v1572_v17, 2  ;;  %v2881_v15 = vpop.f32.mrb[9].mxu0 }
 0x5fe   :  { %v1579_v19 = vadd.f32 %v1577_v11, %v4229_v25 }
 0x600   :  { %v2540_v20 = vmul.f32 -1.442695, %v1579_v19 }
 0x602   :  { %3299 = vpow2.f32 %v2540_v20 }
 0x60c   :  { %v3300_v21 = vpop.eup %3299 }
 0x60d   :  { %v1583_v62 = vadd.f32 1.0, %v3300_v21 }
 0x60f   :  { %3301 = vrcp.f32 %v1583_v62 }
 0x619   :  { %v3302_v22 = vpop.eup %3301 }
 0x61a   :  { %v1586_v61 = vmul.f32 %v3302_v22, %v4233_v12 }
 0x61c   :  { %v1587_v0 = vsub.f32 %v1586_v61, %v4236_v16 }
 0x61e   :  { %v1589_v6 = vrot.slane %v1587_v0, 6 }
 0x620   :  { %1591 = vrot.lane.b32.xlu0 %v1589_v6, %s3368_s9  ;;  %1593 = vrot.lane.b32.xlu1 %v1589_v6, %s3369_s10 }
 0x624   :  { %1595 = vrot.lane.b32.xlu1 %v1589_v6, %s3367_s3 }
 0x692   :  { %v1594_v8 = vpop.permute.xlu1 %1593  ;;  %v1592_v25 = vpop.permute.xlu0 %1591 }
 0x693   :  { %v1599_v9 = vrot.slane %v1594_v8, 2  ;;  %v1597_v11 = vmul.f32 %v1592_v25, %v1503_v2 }
 0x695   :  { %v1601_v17 = vmul.f32 %v1599_v9, %v1587_v0 }
 0x696   :  { %v1596_v21 = vpop.permute.xlu1 %1595 }
 0x697   :  { %v1603_v15 = vrot.slane %v1601_v17, 6 }
 0x699   :  { %v1605_v19 = vadd.f32 %v1603_v15, %v1597_v11 }
 0x69b   :  { %3303 = vtanh.f32 %v1605_v19 }
 0x6a5   :  { %v3304_v20 = vpop.eup %3303 }
 0x6a6   :  { %v1607_v62 = vmul.f32 %v3304_v20, %v1596_v21 }
 0x6a8   :  { %2915 = vmatmul.mubr.f32.vlgmr.msra.gmra.mrb[2].mxu1 %v1607_v62 }
 0x6a9   :  { %3168 = vmatpush3.bf16.msra.mxu1 %v4094_v13  ;;  %2984 = vmatprep.mubr.msk.f32.mxu1 %vm3364_vm0, %v3365_v3 }
 0x6aa   :  { %3169 = vmatprep.subr.bf16.mxu1 %v3363_v1 }
 0x6ad   :  { %3171 = vmatpush3.bf16.msra.mxu1 %v4110_v18 }
 0x6ae   :  { %3172 = vmatprep.subr.bf16.mxu1 %v3363_v1 }
 0x6b1   :  { %3174 = vmatpush3.bf16.msra.mxu1 %v4126_v23 }
 0x6b2   :  { %3175 = vmatprep.subr.bf16.mxu1 %v3363_v1 }
 0x6b5   :  { %3177 = vmatpush3.bf16.msra.mxu1 %v4142_v63 }
 0x6b6   :  { %3178 = vmatprep.subr.bf16.mxu1 %v3363_v1 }
 0x6b9   :  { %3180 = vmatpush3.bf16.msra.mxu1 %v4153_v4 }
 0x6ba   :  { %3181 = vmatprep.subr.bf16.mxu1 %v3363_v1 }
 0x6bd   :  { %3183 = vmatpush3.bf16.msra.mxu1 %v4167_v7 }
 0x6be   :  { %3184 = vmatprep.subr.bf16.mxu1 %v3363_v1 }
 0x6c1   :  { %3186 = vmatpush3.bf16.msra.mxu1 %v4179_v10 }
 0x6c2   :  { %3187 = vmatprep.subr.bf16.mxu1 %v3363_v1 }
 0x6c5   :  { %3189 = vmatpush3.bf16.msra.mxu1 %v4191_v14 }
 0x77b   :  { %v1674_v2 = vpop.f32.mrb[2].mxu1 }
 0x77c   :  { %v1678_v22 = vadd.f32 %v1674_v2, %v4227_v24  ;;  %v2916_v61 = vpop.f32.mrb[3].mxu1 }
 0x77e   :  { %v2541_v0 = vmul.f32 -1.442695, %v1678_v22 }
 0x780   :  { %3305 = vpow2.f32 %v2541_v0 }
 0x78a   :  { %v3306_v6 = vpop.eup %3305 }
 0x78b   :  { %v1682_v8 = vadd.f32 1.0, %v3306_v6 }
 0x78d   :  { %3307 = vrcp.f32 %v1682_v8 }
 0x797   :  { %v3308_v9 = vpop.eup %3307 }
 0x798   :  { %v1685_v25 = vmul.f32 %v3308_v9, %v4233_v12 }
 0x79a   :  { %v1686_v17 = vsub.f32 %v1685_v25, %v4236_v16 }
 0x79c   :  { %1689 = vrot.lane.b32.xlu1 %v1686_v17, %s3369_s10  ;;  %1687 = vrot.lane.b32.xlu0 %v1686_v17, %s3368_s9 }
 0x7a0   :  { %1691 = vrot.lane.b32.xlu0 %v1686_v17, %s3367_s3 }
 0x80e   :  { %v1690_v11 = vpop.permute.xlu1 %1689  ;;  %v1688_v15 = vpop.permute.xlu0 %1687 }
 0x80f   :  { %v1694_v20 = vmul.f32 %v1690_v11, %v1686_v17  ;;  %v1693_v21 = vmul.f32 %v1688_v15, %v1605_v19 }
 0x811   :  { %v1695_v62 = vadd.f32 %v1694_v20, %v1693_v21 }
 0x812   :  { %v1692_v22 = vpop.permute.xlu0 %1691 }
 0x813   :  { %3309 = vtanh.f32 %v1695_v62 }
 0x81d   :  { %v3310_v2 = vpop.eup %3309 }
 0x81e   :  { %v1697_v61 = vmul.f32 %v3310_v2, %v1692_v22 }
 0x820   :  { %2950 = vmatmul.mubr.f32.vlgmr.msra.gmra.mrb[10].mxu0 %v1697_v61 }
 0x821   :  { %3192 = vmatpush3.bf16.msra.mxu0 %v4094_v13  ;;  %3019 = vmatprep.mubr.msk.f32.mxu0 %vm3364_vm0, %v3365_v3 }
 0x822   :  { %3193 = vmatprep.subr.bf16.mxu0 %v3363_v1 }
 0x825   :  { %3195 = vmatpush3.bf16.msra.mxu0 %v4110_v18 }
 0x826   :  { %3196 = vmatprep.subr.bf16.mxu0 %v3363_v1 }
 0x829   :  { %3198 = vmatpush3.bf16.msra.mxu0 %v4126_v23 }
 0x82a   :  { %3199 = vmatprep.subr.bf16.mxu0 %v3363_v1 }
 0x82d   :  { %3201 = vmatpush3.bf16.msra.mxu0 %v4142_v63 }
 0x82e   :  { %3202 = vmatprep.subr.bf16.mxu0 %v3363_v1 }
 0x831   :  { %3204 = vmatpush3.bf16.msra.mxu0 %v4153_v4 }
 0x832   :  { %3205 = vmatprep.subr.bf16.mxu0 %v3363_v1 }
 0x835   :  { %3207 = vmatpush3.bf16.msra.mxu0 %v4167_v7 }
 0x836   :  { %3208 = vmatprep.subr.bf16.mxu0 %v3363_v1 }
 0x839   :  { %3210 = vmatpush3.bf16.msra.mxu0 %v4179_v10 }
 0x83a   :  { %3211 = vmatprep.subr.bf16.mxu0 %v3363_v1 }
 0x83d   :  { %3213 = vmatpush3.bf16.msra.mxu0 %v4191_v14 }
 0x8f3   :  { %v1764_v3 = vpop.f32.mrb[10].mxu0 }
 0x8f4   :  { %v1769_v13 = vrot.slane %v1764_v3, 6  ;;  %v2951_v18 = vpop.f32.mrb[11].mxu0 }
 0x8f6   :  { %v1771_v23 = vadd.f32 %v1769_v13, %v4227_v24 }
 0x8f8   :  { %v2542_v63 = vmul.f32 -1.442695, %v1771_v23 }
 0x8fa   :  { %3311 = vpow2.f32 %v2542_v63 }
 0x904   :  { %v3312_v4 = vpop.eup %3311 }
 0x905   :  { %v1775_v19 = vadd.f32 1.0, %v3312_v4 }
 0x907   :  { %3313 = vrcp.f32 %v1775_v19 }
 0x911   :  { %v3314_v0 = vpop.eup %3313 }
 0x912   :  { %v1778_v7 = vmul.f32 %v3314_v0, %v4233_v12 }
 0x914   :  { %v1779_v6 = vsub.f32 %v1778_v7, %v4236_v16 }
 0x916   :  { %v1781_v10 = vrot.slane %v1779_v6, 2 }
 0x918   :  { %1783 = vrot.lane.b32.xlu0 %v1781_v10, %s3368_s9  ;;  %1785 = vrot.lane.b32.xlu1 %v1781_v10, %s3369_s10 }
 0x91c   :  { %1787 = vrot.lane.b32.xlu1 %v1781_v10, %s3367_s3 }
 0x98a   :  { %v1786_v1 = vpop.permute.xlu1 %1785  ;;  %v1784_v8 = vpop.permute.xlu0 %1783 }
 0x98b   :  { %v1791_v14 = vrot.slane %v1786_v1, 6  ;;  %v1789_v25 = vmul.f32 %v1784_v8, %v1695_v62 }
 0x98d   :  { %v1793_v9 = vmul.f32 %v1791_v14, %v1779_v6 }
 0x98e   :  { %v1788_v20 = vpop.permute.xlu1 %1787 }
 0x98f   :  { %v1795_v17 = vrot.slane %v1793_v9, 2 }
 0x991   :  { %v1797_v11 = vadd.f32 %v1795_v17, %v1789_v25 }
 0x993   :  { %3315 = vtanh.f32 %v1797_v11 }
 0x99d   :  { %v3316_v15 = vpop.eup %3315 }
 0x99e   :  { %v1799_v21 = vmul.f32 %v3316_v15, %v1788_v20 }
 0x9a0   :  { %2985 = vmatmul.mubr.f32.vlgmr.msra.gmra.mrb[4].mxu1 %v1799_v21 }
 0xa73   :  { %v1866_v2 = vpop.f32.mrb[4].mxu1 }
 0xa74   :  { %v1871_v22 = vrot.slane %v1866_v2, 4  ;;  %v2986_v61 = vpop.f32.mrb[5].mxu1 }
 0xa76   :  { %v1873_v3 = vadd.f32 %v1871_v22, %v4227_v24 }
 0xa78   :  { %v2543_v13 = vmul.f32 -1.442695, %v1873_v3 }
 0xa7a   :  { %3317 = vpow2.f32 %v2543_v13 }
 0xa84   :  { %v3318_v18 = vpop.eup %3317 }
 0xa85   :  { %v1877_v23 = vadd.f32 1.0, %v3318_v18 }
 0xa87   :  { %3319 = vrcp.f32 %v1877_v23 }
 0xa91   :  { %v3320_v63 = vpop.eup %3319 }
 0xa92   :  { %v1880_v62 = vmul.f32 %v3320_v63, %v4233_v12 }
 0xa94   :  { %v1881_v4 = vsub.f32 %v1880_v62, %v4236_v16 }
 0xa96   :  { %v1883_v19 = vrot.slane %v1881_v4, 4 }
 0xa98   :  { %1885 = vrot.lane.b32.xlu1 %v1883_v19, %s3368_s9  ;;  %1887 = vrot.lane.b32.xlu0 %v1883_v19, %s3369_s10 }
 0xa9c   :  { %1889 = vrot.lane.b32.xlu0 %v1883_v19, %s3367_s3 }
 0xb0a   :  { %v1888_v0 = vpop.permute.xlu0 %1887  ;;  %v1886_v6 = vpop.permute.xlu1 %1885 }
 0xb0b   :  { %v1893_v7 = vrot.slane %v1888_v0, 4  ;;  %v1891_v1 = vmul.f32 %v1886_v6, %v1797_v11 }
 0xb0d   :  { %v1895_v10 = vmul.f32 %v1893_v7, %v1881_v4 }
 0xb0e   :  { %v1890_v25 = vpop.permute.xlu0 %1889 }
 0xb0f   :  { %v1897_v14 = vrot.slane %v1895_v10, 4 }
 0xb11   :  { %v1899_v8 = vadd.f32 %v1897_v14, %v1891_v1 }
 0xb13   :  { %3321 = vtanh.f32 %v1899_v8 }
 0xb1d   :  { %v3322_v9 = vpop.eup %3321 }
 0xb1e   :  { %v1901_v17 = vmul.f32 %v3322_v9, %v1890_v25 }
 0xb20   :  { %3020 = vmatmul.mubr.f32.vlgmr.msra.gmra.mrb[12].mxu0 %v1901_v17 }
 0xbf3   :  { %v1968_v15 = vpop.f32.mrb[12].mxu0 }
 0xbf4   :  { %v1973_v20 = vrot.slane %v1968_v15, 2  ;;  %v3021_v21 = vpop.f32.mrb[13].mxu0 }
 0xbf6   :  { %v1975_v2 = vadd.f32 %v1973_v20, %v4227_v24 }
 0xbf8   :  { %v2544_v22 = vmul.f32 -1.442695, %v1975_v2 }
 0xbfa   :  { %3323 = vpow2.f32 %v2544_v22 }
 0xc04   :  { %v3324_v61 = vpop.eup %3323 }
 0xc05   :  { %v1979_v3 = vadd.f32 1.0, %v3324_v61 }
 0xc07   :  { %3325 = vrcp.f32 %v1979_v3 }
 0xc11   :  { %v3326_v13 = vpop.eup %3325 }
 0xc12   :  { %v1982_v11 = vmul.f32 %v3326_v13, %v4233_v12 }
 0xc14   :  { %v1983_v18 = vsub.f32 %v1982_v11, %v4236_v16 }
 0xc16   :  { %v1985_v23 = vrot.slane %v1983_v18, 6 }
 0xc18   :  { %1987 = vrot.lane.b32.xlu0 %v1985_v23, %s3368_s9  ;;  %1989 = vrot.lane.b32.xlu1 %v1985_v23, %s3369_s10 }
 0xc1c   :  { %1991 = vrot.lane.b32.xlu1 %v1985_v23, %s3367_s3 }
 0xc8a   :  { %v1990_v63 = vpop.permute.xlu1 %1989  ;;  %v1988_v24 = vpop.permute.xlu0 %1987 }
 0xc8b   :  { %v1995_v62 = vrot.slane %v1990_v63, 2  ;;  %v1993_v19 = vmul.f32 %v1988_v24, %v1899_v8 }
 0xc8d   :  { %v1997_v4 = vmul.f32 %v1995_v62, %v1983_v18 }
 0xc8e   :  { %v1992_v10 = vpop.permute.xlu1 %1991 }
 0xc8f   :  { %v1999_v0 = vrot.slane %v1997_v4, 6 }
 0xc91   :  { %v2001_v7 = vadd.f32 %v1999_v0, %v1993_v19 }
 0xc93   :  { %3327 = vtanh.f32 %v2001_v7 }
 0xc9d   :  { %v3328_v6 = vpop.eup %3327 }
 0xc9e   :  { %v4373_v12 = vmul.f32 %v3328_v6, %v1992_v10 }
 0xc9f   :  { %3355 = dma.done.wait [#allocation5], 4096 }
 0xca0   :  { %3356 = vsyncadd [#allocation5], 4294963200  ;;  %v3370_v16 = vmov 0   ;;  %v2010_v1 = vld [vmem:[#allocation2 + $0x8] sm:$0xff]  ;;  %v2012_v14 = vld [vmem:[#allocation2 + $0x18] sm:$0xff] }
 0xca1   :  { %2094 = vmatprep.mubr.bf16.mxu1 %v3370_v16  ;;  %2135 = vmatprep.mubr.bf16.mxu0 %v3370_v16  ;;  %v2009_v9 = vld [vmem:[#allocation2] sm:$0xff]  ;;  %v2011_v25 = vld [vmem:[#allocation2 + $0x10] sm:$0xff]  ;;  %v2014_v17 = vld [vmem:[#allocation2 + $0x28] sm:$0xff] }
 0xca2   :  { %2062 = vmatprep.subr.bf16.mxu1 %v2010_v1  ;;  %2103 = vmatprep.subr.bf16.mxu0 %v2012_v14  ;;  %v2016_v8 = vld [vmem:[#allocation2 + $0x38] sm:$0xff]  ;;  %v2013_v15 = vld [vmem:[#allocation2 + $0x20] sm:$0xff]  ;;  %v2015_v20 = vld [vmem:[#allocation2 + $0x30] sm:$0xff] }
 0xca3   :  { %2063 = vmatpush1.bf16.msra.mxu1 %v2009_v9  ;;  %2104 = vmatpush1.bf16.msra.mxu0 %v2011_v25  ;;  %v2018_v21 = vld [vmem:[#allocation2 + $0x48] sm:$0xff]  ;;  %v2020_v2 = vld [vmem:[#allocation2 + $0x58] sm:$0xff]  ;;  %v2017_v22 = vld [vmem:[#allocation2 + $0x40] sm:$0xff] }
 0xca4   :  { %2064 = vmatprep.subr.bf16.mxu1 %v2014_v17  ;;  %2105 = vmatprep.subr.bf16.mxu0 %v2016_v8  ;;  %v2019_v61 = vld [vmem:[#allocation2 + $0x50] sm:$0xff]  ;;  %v2022_v3 = vld [vmem:[#allocation2 + $0x68] sm:$0xff]  ;;  %v2024_v13 = vld [vmem:[#allocation2 + $0x78] sm:$0xff]  ;;  %v2008_v8 = vpack.c.bf16 %v4373_v12, %v4373_v12 }
 0xca5   :  { %v2021_v11 = vld [vmem:[#allocation2 + $0x60] sm:$0xff]  ;;  %v2023_v18 = vld [vmem:[#allocation2 + $0x70] sm:$0xff]  ;;  %v2026_v23 = vld [vmem:[#allocation2 + $0x88] sm:$0xff] }
 0xca6   :  { %v2028_v63 = vld [vmem:[#allocation2 + $0x98] sm:$0xff]  ;;  %v2025_v62 = vld [vmem:[#allocation2 + $0x80] sm:$0xff]  ;;  %v2027_v24 = vld [vmem:[#allocation2 + $0x90] sm:$0xff] }
 0xca7   :  { %2065 = vmatpush1.bf16.msra.mxu1 %v2013_v15  ;;  %2106 = vmatpush1.bf16.msra.mxu0 %v2015_v20  ;;  %v2030_v4 = vld [vmem:[#allocation2 + $0xa8] sm:$0xff]  ;;  %v2032_v19 = vld [vmem:[#allocation2 + $0xb8] sm:$0xff]  ;;  %v2029_v0 = vld [vmem:[#allocation2 + $0xa0] sm:$0xff]  ;;  %v4378_v15 = vshrl.u32 %v1205_v5, 7 }
 0xca8   :  { %2066 = vmatprep.subr.bf16.mxu1 %v2018_v21  ;;  %2107 = vmatprep.subr.bf16.mxu0 %v2020_v2  ;;  %v2031_v7 = vld [vmem:[#allocation2 + $0xb0] sm:$0xff]  ;;  %v2034_v6 = vld [vmem:[#allocation2 + $0xc8] sm:$0xff]  ;;  %v2036_v10 = vld [vmem:[#allocation2 + $0xd8] sm:$0xff] }
 0xca9   :  { %v2033_v16 = vld [vmem:[#allocation2 + $0xc0] sm:$0xff]  ;;  %v2035_v1 = vld [vmem:[#allocation2 + $0xd0] sm:$0xff]  ;;  %v2038_v14 = vld [vmem:[#allocation2 + $0xe8] sm:$0xff]  ;;  %v2044_v20 = vsub.s32 0, %v4378_v15  ;;  %v2052_v21 = vsub.s32 2, %v4378_v15  ;;  %v2048_v2 = vsub.s32 1, %v4378_v15 }
 0xcaa   :  { %v2040_v9 = vld [vmem:[#allocation2 + $0xf8] sm:$0xff]  ;;  %v2037_v25 = vld [vmem:[#allocation2 + $0xe0] sm:$0xff]  ;;  %v2039_v17 = vld [vmem:[#allocation2 + $0xf0] sm:$0xff] }
 0xcab   :  { %2067 = vmatpush1.bf16.msra.mxu1 %v2017_v22  ;;  %2108 = vmatpush1.bf16.msra.mxu0 %v2019_v61  ;;  %v2056_v22 = vsub.s32 3, %v4378_v15  ;;  %v2045_v61 = vrot.slane %v4037_v58, %v2044_v20  ;;  %v2053_v12 = vrot.slane %v4037_v58, %v2052_v21 }
 0xcac   :  { %2068 = vmatprep.subr.bf16.mxu1 %v2022_v3  ;;  %2109 = vmatprep.subr.bf16.mxu0 %v2024_v13  ;;  %v2049_v3 = vrot.slane %v4037_v58, %v2048_v2 }
 0xcad   :  { %v2057_v5 = vrot.slane %v4037_v58, %v2056_v22 }
 0xcaf   :  { %2069 = vmatpush1.bf16.msra.mxu1 %v2021_v11  ;;  %2110 = vmatpush1.bf16.msra.mxu0 %v2023_v18 }
 0xcb0   :  { %2070 = vmatprep.subr.bf16.mxu1 %v2026_v23  ;;  %2111 = vmatprep.subr.bf16.mxu0 %v2028_v63 }
 0xcb3   :  { %2071 = vmatpush1.bf16.msra.mxu1 %v2025_v62  ;;  %2112 = vmatpush1.bf16.msra.mxu0 %v2027_v24 }
 0xcb4   :  { %2072 = vmatprep.subr.bf16.mxu1 %v2030_v4  ;;  %2113 = vmatprep.subr.bf16.mxu0 %v2032_v19 }
 0xcb7   :  { %2073 = vmatpush1.bf16.msra.mxu1 %v2029_v0  ;;  %2114 = vmatpush1.bf16.msra.mxu0 %v2031_v7 }
 0xcb8   :  { %2074 = vmatprep.subr.bf16.mxu1 %v2034_v6  ;;  %2115 = vmatprep.subr.bf16.mxu0 %v2036_v10 }
 0xcbb   :  { %2075 = vmatpush1.bf16.msra.mxu1 %v2033_v16  ;;  %2116 = vmatpush1.bf16.msra.mxu0 %v2035_v1 }
 0xcbc   :  { %2076 = vmatprep.subr.bf16.mxu1 %v2038_v14  ;;  %2117 = vmatprep.subr.bf16.mxu0 %v2040_v9 }
 0xcbf   :  { %2077 = vmatpush1.bf16.msra.mxu1 %v2037_v25  ;;  %2118 = vmatpush1.bf16.msra.mxu0 %v2039_v17 }
 0xcc2   :  { %2095 = vmatmul.mubr.bf16.vlgmr.msra.gmra.mrb[8].mxu1 %v2008_v8  ;;  %2136 = vmatmul.mubr.bf16.vlgmr.msra.gmra.mrb[16].mxu0 %v2008_v8 }
 0xd95   :  { %v2096_v13 = vpop.f32.mrb[8].mxu1  ;;  %v2137_v11 = vpop.f32.mrb[16].mxu0 }
 0xd96   :  { %v4392_v18 = vadd.f32 %v2096_v13, %v2045_v61  ;;  %v4394_v23 = vadd.f32 %v2137_v11, %v2053_v12  ;;  %v2098_v63 = vpop.f32.mrb[9].mxu1  ;;  %v2139_v62 = vpop.f32.mrb[17].mxu0 }
 0xd97   :  { %v2099_v24 = vadd.f32 %v2098_v63, %v2049_v3  ;;  %v4396_v4 = vadd.f32 %v2139_v62, %v2057_v5  ;;  %v2100_v19 = vpop.f32.mrb[10].mxu1  ;;  %v2141_v0 = vpop.f32.mrb[18].mxu0 }
 0xd98   :  { %v2144_v7 = vmax.f32 %v4392_v18, 0.0  ;;  %v2146_v6 = vmax.f32 %v4394_v23, 0.0  ;;  %v2101_v10 = vpop.f32.mrb[11].mxu1  ;;  %v2142_v16 = vpop.f32.mrb[19].mxu0 }
 0xd99   :  { %v2145_v58 = vmax.f32 %v2099_v24, 0.0  ;;  %v2147_v1 = vmax.f32 %v4396_v4, 0.0 }
 0xd9a   :  { %3357 = dma.done.wait [#allocation5 + $0x1], 8192 }
 0xd9b   :  { %3358 = vsyncadd [#allocation5 + $0x1], 4294959104  ;;  %v2153_v14 = vpack.c.bf16 %v2145_v58, %v2145_v58  ;;  %v2157_v9 = vld [vmem:[#allocation3 + $0x8] sm:$0xff]  ;;  %v2156_v25 = vld [vmem:[#allocation3] sm:$0xff] }
 0xd9c   :  { %v2159_v17 = vld [vmem:[#allocation3 + $0x18] sm:$0xff]  ;;  %2231 = vmatprep.subr.bf16.mxu1 %v2157_v9  ;;  %v2158_v8 = vld [vmem:[#allocation3 + $0x10] sm:$0xff]  ;;  %v2161_v21 = vld [vmem:[#allocation3 + $0x28] sm:$0xff] }
 0xd9d   :  { %2263 = vmatprep.mubr.bf16.mxu1 %v2153_v14  ;;  %2232 = vmatpush1.bf16.msra.mxu1 %v2156_v25  ;;  %v2160_v22 = vld [vmem:[#allocation3 + $0x20] sm:$0xff]  ;;  %v2163_v61 = vld [vmem:[#allocation3 + $0x38] sm:$0xff]  ;;  %v2162_v12 = vld [vmem:[#allocation3 + $0x30] sm:$0xff] }
 0xd9e   :  { %2233 = vmatprep.subr.bf16.mxu1 %v2159_v17  ;;  %v2165_v3 = vld [vmem:[#allocation3 + $0x48] sm:$0xff]  ;;  %v2164_v5 = vld [vmem:[#allocation3 + $0x40] sm:$0xff]  ;;  %v2167_v13 = vld [vmem:[#allocation3 + $0x58] sm:$0xff] }
 0xd9f   :  { %v2166_v11 = vld [vmem:[#allocation3 + $0x50] sm:$0xff]  ;;  %v2169_v63 = vld [vmem:[#allocation3 + $0x68] sm:$0xff]  ;;  %v2168_v62 = vld [vmem:[#allocation3 + $0x60] sm:$0xff] }
 0xda0   :  { %v2171_v24 = vld [vmem:[#allocation3 + $0x78] sm:$0xff]  ;;  %v2170_v19 = vld [vmem:[#allocation3 + $0x70] sm:$0xff]  ;;  %v2173_v0 = vld [vmem:[#allocation3 + $0x88] sm:$0xff] }
 0xda1   :  { %2234 = vmatpush1.bf16.msra.mxu1 %v2158_v8  ;;  %v2172_v10 = vld [vmem:[#allocation3 + $0x80] sm:$0xff]  ;;  %v2175_v16 = vld [vmem:[#allocation3 + $0x98] sm:$0xff]  ;;  %v2174_v58 = vld [vmem:[#allocation3 + $0x90] sm:$0xff] }
 0xda2   :  { %2235 = vmatprep.subr.bf16.mxu1 %v2161_v21  ;;  %v2177_v14 = vld [vmem:[#allocation3 + $0xa8] sm:$0xff]  ;;  %v2176_v9 = vld [vmem:[#allocation3 + $0xa0] sm:$0xff]  ;;  %v2179_v25 = vld [vmem:[#allocation3 + $0xb8] sm:$0xff] }
 0xda3   :  { %v2178_v17 = vld [vmem:[#allocation3 + $0xb0] sm:$0xff]  ;;  %v2181_v8 = vld [vmem:[#allocation3 + $0xc8] sm:$0xff]  ;;  %v2180_v21 = vld [vmem:[#allocation3 + $0xc0] sm:$0xff] }
 0xda4   :  { %v2195_v18 = vld [vmem:[#allocation3 + $0x138] sm:$0xff]  ;;  %v2196_v4 = vld [vmem:[#allocation3 + $0x140] sm:$0xff] }
 0xda5   :  { %2236 = vmatpush1.bf16.msra.mxu1 %v2160_v22  ;;  %v2183_v22 = vld [vmem:[#allocation3 + $0xd8] sm:$0xff] }
 0xda6   :  { %2237 = vmatprep.subr.bf16.mxu1 %v2163_v61  ;;  %v2182_v61 = vld [vmem:[#allocation3 + $0xd0] sm:$0xff] }
 0xda9   :  { %2238 = vmatpush1.bf16.msra.mxu1 %v2162_v12  ;;  %v2185_v12 = vld [vmem:[#allocation3 + $0xe8] sm:$0xff] }
 0xdaa   :  { %2239 = vmatprep.subr.bf16.mxu1 %v2165_v3  ;;  %v2184_v3 = vld [vmem:[#allocation3 + $0xe0] sm:$0xff] }
 0xdad   :  { %2240 = vmatpush1.bf16.msra.mxu1 %v2164_v5  ;;  %v2187_v5 = vld [vmem:[#allocation3 + $0xf8] sm:$0xff] }
 0xdae   :  { %2241 = vmatprep.subr.bf16.mxu1 %v2167_v13  ;;  %v2186_v13 = vld [vmem:[#allocation3 + $0xf0] sm:$0xff] }
 0xdb1   :  { %2242 = vmatpush1.bf16.msra.mxu1 %v2166_v11  ;;  %v2189_v11 = vld [vmem:[#allocation3 + $0x108] sm:$0xff] }
 0xdb2   :  { %2243 = vmatprep.subr.bf16.mxu1 %v2169_v63  ;;  %v2152_v63 = vpack.c.bf16 %v2144_v7, %v2144_v7  ;;  %v2194_v7 = vld [vmem:[#allocation3 + $0x130] sm:$0xff] }
 0xdb5   :  { %2244 = vmatpush1.bf16.msra.mxu1 %v2168_v62  ;;  %v2155_v62 = vpack.c.bf16 %v2147_v1, %v2147_v1  ;;  %v2199_v1 = vld [vmem:[#allocation3 + $0x158] sm:$0xff] }
 0xdb6   :  { %2245 = vmatprep.subr.bf16.mxu1 %v2171_v24  ;;  %v2188_v24 = vld [vmem:[#allocation3 + $0x100] sm:$0xff] }
 0xdb9   :  { %2246 = vmatpush1.bf16.msra.mxu1 %v2170_v19  ;;  %v2191_v19 = vld [vmem:[#allocation3 + $0x118] sm:$0xff] }
 0xdba   :  { %2247 = vmatprep.subr.bf16.mxu1 %v2173_v0  ;;  %v2190_v0 = vld [vmem:[#allocation3 + $0x110] sm:$0xff] }
 0xdbd   :  { %2248 = vmatpush1.bf16.msra.mxu1 %v2172_v10  ;;  %v2193_v10 = vld [vmem:[#allocation3 + $0x128] sm:$0xff] }
 0xdbe   :  { %2249 = vmatprep.subr.bf16.mxu1 %v2175_v16  ;;  %v2192_v16 = vld [vmem:[#allocation3 + $0x120] sm:$0xff] }
 0xdc1   :  { %2250 = vmatpush1.bf16.msra.mxu1 %v2174_v58  ;;  %v2197_v58 = vld [vmem:[#allocation3 + $0x148] sm:$0xff] }
 0xdc2   :  { %2251 = vmatprep.subr.bf16.mxu1 %v2177_v14  ;;  %v2198_v14 = vld [vmem:[#allocation3 + $0x150] sm:$0xff] }
 0xdc5   :  { %2252 = vmatpush1.bf16.msra.mxu1 %v2176_v9  ;;  %v2201_v9 = vld [vmem:[#allocation3 + $0x168] sm:$0xff] }
 0xdc6   :  { %2253 = vmatprep.subr.bf16.mxu1 %v2179_v25  ;;  %v2200_v25 = vld [vmem:[#allocation3 + $0x160] sm:$0xff] }
 0xdc9   :  { %2254 = vmatpush1.bf16.msra.mxu1 %v2178_v17  ;;  %v2203_v17 = vld [vmem:[#allocation3 + $0x178] sm:$0xff] }
 0xdca   :  { %2255 = vmatprep.subr.bf16.mxu1 %v2181_v8  ;;  %v2202_v8 = vld [vmem:[#allocation3 + $0x170] sm:$0xff] }
 0xdcd   :  { %2256 = vmatpush1.bf16.msra.mxu1 %v2180_v21  ;;  %v2205_v21 = vld [vmem:[#allocation3 + $0x188] sm:$0xff] }
 0xdce   :  { %2257 = vmatprep.subr.bf16.mxu1 %v2183_v22  ;;  %v2204_v22 = vld [vmem:[#allocation3 + $0x180] sm:$0xff] }
 0xdd1   :  { %2258 = vmatpush1.bf16.msra.mxu1 %v2182_v61  ;;  %v2207_v61 = vld [vmem:[#allocation3 + $0x198] sm:$0xff] }
 0xdd2   :  { %2259 = vmatprep.subr.bf16.mxu1 %v2185_v12  ;;  %v2206_v12 = vld [vmem:[#allocation3 + $0x190] sm:$0xff] }
 0xdd5   :  { %2260 = vmatpush1.bf16.msra.mxu1 %v2184_v3  ;;  %v2209_v3 = vld [vmem:[#allocation3 + $0x1a8] sm:$0xff] }
 0xdd6   :  { %2261 = vmatprep.subr.bf16.mxu1 %v2187_v5  ;;  %v2208_v5 = vld [vmem:[#allocation3 + $0x1a0] sm:$0xff] }
 0xdd9   :  { %2262 = vmatpush1.bf16.msra.mxu1 %v2186_v13  ;;  %v2211_v13 = vld [vmem:[#allocation3 + $0x1b8] sm:$0xff] }
 0xdda   :  { %2272 = vmatprep.subr.bf16.mxu1 %v2189_v11  ;;  %v2210_v11 = vld [vmem:[#allocation3 + $0x1b0] sm:$0xff] }
 0xddc   :  { %2264 = vmatmul.mubr.bf16.vlgmr.msra.gmra.mrb[12].mxu1 %v2152_v63  ;;  %v2213_v63 = vld [vmem:[#allocation3 + $0x1c8] sm:$0xff] }
 0xddd   :  { %2273 = vmatpush1.bf16.msra.mxu1 %v2188_v24  ;;  %2304 = vmatprep.mubr.bf16.mxu1 %v2155_v62  ;;  %v2212_v62 = vld [vmem:[#allocation3 + $0x1c0] sm:$0xff]  ;;  %v2215_v24 = vld [vmem:[#allocation3 + $0x1d8] sm:$0xff] }
 0xdde   :  { %2274 = vmatprep.subr.bf16.mxu1 %v2191_v19  ;;  %v2214_v19 = vld [vmem:[#allocation3 + $0x1d0] sm:$0xff] }
 0xde1   :  { %2275 = vmatpush1.bf16.msra.mxu1 %v2190_v0  ;;  %v2217_v0 = vld [vmem:[#allocation3 + $0x1e8] sm:$0xff] }
 0xde2   :  { %2276 = vmatprep.subr.bf16.mxu1 %v2193_v10  ;;  %v2216_v10 = vld [vmem:[#allocation3 + $0x1e0] sm:$0xff] }
 0xde5   :  { %2277 = vmatpush1.bf16.msra.mxu1 %v2192_v16  ;;  %v2219_v16 = vld [vmem:[#allocation3 + $0x1f8] sm:$0xff] }
 0xde6   :  { %2278 = vmatprep.subr.bf16.mxu1 %v2195_v18  ;;  %v2218_v18 = vld [vmem:[#allocation3 + $0x1f0] sm:$0xff] }
 0xde9   :  { %2279 = vmatpush1.bf16.msra.mxu1 %v2194_v7  ;;  %v2154_v7 = vpack.c.bf16 %v2146_v6, %v2146_v6  ;;  %v3214_v6 = vpack.c.bf16 %v3962_v43, %v3957_v42 }
 0xdea   :  { %2280 = vmatprep.subr.bf16.mxu1 %v2197_v58  ;;  %v2224_v58 = vrot.slane %v4042_v59, %v2044_v20  ;;  %v3218_v20 = vpack.c.bf16 %v3972_v45, %v3967_v44 }
 0xded   :  { %2281 = vmatpush1.bf16.msra.mxu1 %v2196_v4  ;;  %v2228_v4 = vrot.slane %v4042_v59, %v2048_v2 }
 0xdee   :  { %2282 = vmatprep.subr.bf16.mxu1 %v2199_v1 }
 0xdf1   :  { %2283 = vmatpush1.bf16.msra.mxu1 %v2198_v14 }
 0xdf2   :  { %2284 = vmatprep.subr.bf16.mxu1 %v2201_v9 }
 0xdf5   :  { %2285 = vmatpush1.bf16.msra.mxu1 %v2200_v25 }
 0xdf6   :  { %2286 = vmatprep.subr.bf16.mxu1 %v2203_v17 }
 0xdf9   :  { %2287 = vmatpush1.bf16.msra.mxu1 %v2202_v8 }
 0xdfa   :  { %2288 = vmatprep.subr.bf16.mxu1 %v2205_v21 }
 0xdfd   :  { %2289 = vmatpush1.bf16.msra.mxu1 %v2204_v22  ;;  %v3216_v22 = vpack.c.bf16 %v3882_v27, %v3877_v26 }
 0xdfe   :  { %2290 = vmatprep.subr.bf16.mxu1 %v2207_v61 }
 0xe01   :  { %2291 = vmatpush1.bf16.msra.mxu1 %v2206_v12 }
 0xe02   :  { %2292 = vmatprep.subr.bf16.mxu1 %v2209_v3 }
 0xe05   :  { %2293 = vmatpush1.bf16.msra.mxu1 %v2208_v5 }
 0xe06   :  { %2294 = vmatprep.subr.bf16.mxu1 %v2211_v13 }
 0xe09   :  { %2295 = vmatpush1.bf16.msra.mxu1 %v2210_v11 }
 0xe0a   :  { %2296 = vmatprep.subr.bf16.mxu1 %v2213_v63 }
 0xe0d   :  { %2297 = vmatpush1.bf16.msra.mxu1 %v2212_v62 }
 0xe0e   :  { %2298 = vmatprep.subr.bf16.mxu1 %v2215_v24 }
 0xe11   :  { %2299 = vmatpush1.bf16.msra.mxu1 %v2214_v19 }
 0xe12   :  { %2300 = vmatprep.subr.bf16.mxu1 %v2217_v0 }
 0xe15   :  { %2301 = vmatpush1.bf16.msra.mxu1 %v2216_v10 }
 0xe16   :  { %2302 = vmatprep.subr.bf16.mxu1 %v2219_v16 }
 0xe19   :  { %2303 = vmatpush1.bf16.msra.mxu1 %v2218_v18 }
 0xe1c   :  { %2305 = vmatmul.mubr.bf16.vlgmr.msra.gmra.mrb[12].mxu1 %v2154_v7 }
 0xeef   :  { %v2306_v1 = vpop.f32.mrb[12].mxu1 }
 0xef0   :  { %v3246_v14 = vadd.f32 %v2306_v1, %v2224_v58  ;;  %v2308_v9 = vpop.f32.mrb[13].mxu1 }
 0xef1   :  { %v3247_v25 = vadd.f32 %v2308_v9, %v2228_v4  ;;  %v2310_v17 = vpop.f32.mrb[14].mxu1 }
 0xef2   :  { %v2313_v8 = vmax.f32 %v3246_v14, 0.0  ;;  %v2311_v21 = vpop.f32.mrb[15].mxu1 }
 0xef3   :  { %v2314_v23 = vmax.f32 %v3247_v25, 0.0 }
 0xef5   :  { %2420 = vmatprep.mubr.f32.mxu0 %v2314_v23 }
 0xef6   :  { %3359 = dma.done.wait [#allocation5 + $0x2], 4096 }
 0xef7   :  { %3360 = vsyncadd [#allocation5 + $0x2], 4294963200  ;;  %3215 = vmatprep.subr.bf16.mxu0 %v3214_v6  ;;  %v3220_v59 = vpack.c.bf16 %v3892_v29, %v3887_v28  ;;  %v3222_v15 = vpack.c.bf16 %v3982_v47, %v3977_v46  ;;  %v3224_v42 = vpack.c.bf16 %v3902_v31, %v3897_v30  ;;  %v3226_v26 = vpack.c.bf16 %v3992_v49, %v3987_v48  ;;  %s3371_s11 = smov [#allocation6]  }
 0xef8   :  { %3217 = vmatpush3.bf16.msra.mxu0 %v3216_v22  ;;  %v3228_v27 = vpack.c.bf16 %v3912_v33, %v3907_v32  ;;  %v3230_v28 = vpack.c.bf16 %v4002_v51, %v3997_v50  ;;  %v3232_v29 = vpack.c.bf16 %v3922_v35, %v3917_v34  ;;  %v3234_v30 = vpack.c.bf16 %v4012_v53, %v4007_v52  ;;  %s2453_s12 = sshll.u32 %s3371_s11, 4  ;;  %s2454_s12 = int_to_ptr.vmem [resolvable:$true] %s2453_s12 }
 0xef9   :  { %3219 = vmatprep.subr.bf16.mxu0 %v3218_v20  ;;  %v3236_v31 = vpack.c.bf16 %v3932_v37, %v3927_v36  ;;  %v3238_v32 = vpack.c.bf16 %v4022_v55, %v4017_v54  ;;  %v3240_v33 = vpack.c.bf16 %v3942_v39, %v3937_v38  ;;  %v3242_v34 = vpack.c.bf16 %v4032_v57, %v4027_v56  ;;  %s3333_s13 = scalar_lea.vmem %s2454_s12, 32  ;;  %p3338_p1 = scmp.lt.s32.totalorder %s2454_s12, %s2454_s12 }
 0xefa   :  { %v3244_v35 = vpack.c.bf16 %v3952_v41, %v3947_v40  ;;  %vm2426_vm6 = vcmask 1041408   ;;  %p3334_p0 = scmp.ne.s32.totalorder %s2454_s12, %s3333_s13  ;;  %p3339_p2 = scmp.lt.s32.totalorder %s3333_s13, %s3333_s13 }
 0xefc   :  { %3221 = vmatpush3.bf16.msra.mxu0 %v3220_v59  ;;  %p3340_p3 = por %p3339_p2, %p3338_p1 }
 0xefd   :  { %3223 = vmatprep.subr.bf16.mxu0 %v3222_v15 }
 0xefe   :  { %p3341_p4 = pnand %p3340_p3, %p3334_p0 }
 0xf00   :  { %3225 = vmatpush3.bf16.msra.mxu0 %v3224_v42 }
 0xf01   :  { %3227 = vmatprep.subr.bf16.mxu0 %v3226_v26 }
 0xf04   :  { %3229 = vmatpush3.bf16.msra.mxu0 %v3228_v27 }
 0xf05   :  { %3231 = vmatprep.subr.bf16.mxu0 %v3230_v28 }
 0xf08   :  { %3233 = vmatpush3.bf16.msra.mxu0 %v3232_v29 }
 0xf09   :  { %3235 = vmatprep.subr.bf16.mxu0 %v3234_v30 }
 0xf0c   :  { %3237 = vmatpush3.bf16.msra.mxu0 %v3236_v31 }
 0xf0d   :  { %3239 = vmatprep.subr.bf16.mxu0 %v3238_v32 }
 0xf10   :  { %3241 = vmatpush3.bf16.msra.mxu0 %v3240_v33 }
 0xf11   :  { %3243 = vmatprep.subr.bf16.mxu0 %v3242_v34 }
 0xf14   :  { %3245 = vmatpush3.bf16.msra.mxu0 %v3244_v35 }
 0xf17   :  { %2421 = vmatmul.mubr.f32.vlgmr.msra.gmra.mrb[14].mxu0 %v2313_v8 }
 0xfea   :  { %v2739_v36 = vpop.f32.mrb[14].mxu0 }
 0xfeb   :  { %v2740_v37 = vpop.f32.mrb[15].mxu0 }
 0xfec   :  { %v2741_v43 = vadd.f32 %v2740_v37, %v2739_v36 }
 0xfee   :  { %v2423_v44 = vadd.f32 %v2741_v43, %v4047_v60 }
 0xff0   :  { %v2427_v45 = vsel %vm2426_vm6, %v2423_v44, -inf }
 0xff1   :  { %v2428_v46 = vrot.slane %v2427_v45, 4 }
 0xff3   :  { %v2429_v38 = vmax.f32 %v2427_v45, %v2428_v46 }
 0xff5   :  { %v2430_v39 = vrot.slane %v2429_v38, 2 }
 0xff7   :  { %v2431_v47 = vmax.f32 %v2429_v38, %v2430_v39 }
 0xff9   :  { %v2432_v48 = vrot.slane %v2431_v47, 1 }
 0xffb   :  { %v2433_v49 = vmax.f32 %v2431_v47, %v2432_v48 }
 0xffd   :  { %v2434_v50 = vsub.f32 %v2423_v44, %v2433_v49 }
 0xfff   :  { %v2435_v51 = vmul.f32 1.442695, %v2434_v50 }
0x1001   :  { %3329 = vpow2.f32 %v2435_v51 }
0x100b   :  { %v3330_v40 = vpop.eup %3329 }
0x100c   :  { %v2437_v41 = vsel %vm2426_vm6, %v3330_v40, 0.0 }
0x100d   :  { %v2438_v52 = vrot.slane %v2437_v41, 4 }
0x100f   :  { %v2439_v53 = vadd.f32 %v2438_v52, %v2437_v41 }
0x1011   :  { %v2440_v54 = vrot.slane %v2439_v53, 2 }
0x1013   :  { %v2441_v55 = vadd.f32 %v2440_v54, %v2439_v53 }
0x1015   :  { %v2442_v56 = vrot.slane %v2441_v55, 1 }
0x1017   :  { %v2443_v57 = vadd.f32 %v2442_v56, %v2441_v55 }
0x1019   :  { %3331 = vrcp.f32 %v2443_v57 }
0x1023   :  { %v3332_v60 = vpop.eup %3331 }
0x1024   :  { %v2445_v2 = vmul.f32 %v3332_v60, %v3330_v40 }
0x1026   :  { %2446 = vst [vmem:[#allocation6] sm:$0x3] %v2445_v2 }
0x1027   :  { %3344 = shalt.err (!%p3341_p4)
}
0x1028   :  { %s3345_s16 = scalar_lea.hbm %s4468_s7, 32 }
0x1029   :  { %p3346_p5 = scmp.ne.s32.totalorder %s4468_s7, %s3345_s16  ;;  %p3349_p6 = scmp.lt.u32.totalorder %s3345_s16, %s4468_s7 }
0x102b   :  { %p3351_p7 = pnand %p3349_p6, %p3346_p5 }
0x102d   :  { %3354 = shalt.err (!%p3351_p7)
}
0x102e   :  { %2456 = dma.vmem_to_hbm [thread:$0]  %s2454_s12, 32, %s4468_s7, [#allocation7]  }
0x102f   :  { %3361 = dma.done.wait [#allocation7], 32  }
0x1030   :  { %3362 = vsyncadd [#allocation7], 4294967264 }
0x1031   :  { %2460 = vsyncpa [#allocation7], 1 }
0x1032   :  { %2461 = vsyncmov [#allocation5] }
0x1035   :  { %s2462_s6 = vpop.sfrf %2461 }
0x1036   :  { %p2546_p8 = scmp.ne.s32.totalorder %s2462_s6, 0 }
0x1038   :  { %2466 = shalt.err (%p2546_p8)  }
0x1039   :  { %2468 = vsyncmov [#allocation5 + $0x1] }
0x103c   :  { %s2469_s0 = vpop.sfrf %2468 }
0x103d   :  { %p2547_p9 = scmp.ne.s32.totalorder %s2469_s0, 0 }
0x103f   :  { %2473 = shalt.err (%p2547_p9)  }
0x1040   :  { %2475 = vsyncmov [#allocation5 + $0x2] }
0x1043   :  { %s2476_s22 = vpop.sfrf %2475 }
0x1044   :  { %p2548_p10 = scmp.ne.s32.totalorder %s2476_s22, 0 }
0x1046   :  { %2480 = shalt.err (%p2548_p10)  }

</bundles_post_ra>
